<compile_context>
chip_gen: v5e
topology: v5e:2x2
jax: 0.10.0
libtpu: 0.0.40
codegen_flags: <defaults>
</compile_context>

<pallas_src>
import jax
import jax.numpy as jnp
from jax.experimental import pallas as pl
from jax.experimental.pallas import tpu as pltpu

EPS = 1e-5
_VMEM_LIMIT = 32 * 1024 * 1024  # valid on v5e/v6e (128 MiB phys) and v7x (64 MiB)


def _compiler_params():
    return pltpu.CompilerParams(
        dimension_semantics=("parallel", "parallel"),
        vmem_limit_bytes=_VMEM_LIMIT,
    )


def _pick_row_tile(H, W, c_max, budget_bytes=8 << 20):
    """Largest divisor of H whose working set (~8 f32 tiles of width c_max:
    double-buffered in/out blocks + im2col scratch) fits a conservative
    per-step VMEM budget (sized with headroom for v7x's 64 MiB VMEM)."""
    best = 1
    for t in range(1, H + 1):
        if H % t == 0 and 8 * t * W * c_max * 4 <= budget_bytes:
            best = t
    return best


def _partial_stats(y):
    """(sum, sumsq) over the pixel axis of a (pixels, C) f32 array -> (2, C)."""
    return jnp.concatenate(
        [jnp.sum(y, axis=0, keepdims=True),
         jnp.sum(y * y, axis=0, keepdims=True)], axis=0)


# ---------------------------------------------------------------------------
# kernels
# ---------------------------------------------------------------------------
def _conv1x1_stats_kernel(x_ref, w_ref, y_ref, st_ref):
    """y = x @ w (bf16 operands, f32 accumulate) + per-tile sum/sumsq of y."""
    _, ht, w, cin = x_ref.shape
    cout = w_ref.shape[1]
    x = x_ref[...].reshape(ht * w, cin).astype(jnp.bfloat16)
    y = jnp.dot(x, w_ref[...], preferred_element_type=jnp.float32)
    y_ref[...] = y.reshape(1, ht, w, cout)
    st_ref[...] = _partial_stats(y).reshape(1, 1, 2, cout)


def _bn_relu_conv3x3_stats_kernel(yc_ref, yt_ref, yb_ref, s_ref, b_ref,
                                  w_ref, o_ref, st_ref, col_ref):
    """h = relu(y*scale+shift); o = 3x3 conv(h), pad=1, stride=1.

    dx taps are folded into the contraction axis (K = 3*P) via the im2col
    scratch `col_ref`; dy taps are 3 accumulated MXU matmuls.  The 1-row
    top/bottom halo arrives through yt_ref / yb_ref (clamped index_map) and is
    zeroed at the image border.  Only boundary columns are zero-filled.
    """
    _, ht, w, p = yc_ref.shape
    j = pl.program_id(1)
    last = pl.num_programs(1) - 1

    scale = s_ref[...]          # (1, P)
    shift = b_ref[...]

    def bn_relu(v):             # v: (..., P) f32
        return jnp.maximum(v * scale + shift, 0.0)

    center = bn_relu(yc_ref[...].reshape(ht, w, p))
    top_act = bn_relu(yt_ref[...].reshape(1, w, p))
    bot_act = bn_relu(yb_ref[...].reshape(1, w, p))
    top = jnp.where(j > 0, top_act, jnp.zeros_like(top_act))
    bot = jnp.where(j < last, bot_act, jnp.zeros_like(bot_act))
    act = jnp.concatenate([top, center, bot], axis=0)         # (ht+2, W, P)

    zcol = jnp.zeros((ht + 2, 1, p), jnp.float32)
    # dx = 1 : centre tap
    col_ref[:, :, p:2 * p] = act
    # dx = 0 : reads column c-1 (zero at the left image border)
    col_ref[:, 1:w, 0:p] = act[:, 0:w - 1, :]
    col_ref[:, 0:1, 0:p] = zcol
    # dx = 2 : reads column c+1 (zero at the right image border)
    col_ref[:, 0:w - 1, 2 * p:3 * p] = act[:, 1:w, :]
    col_ref[:, w - 1:w, 2 * p:3 * p] = zcol

    acc = None
    for dy in range(3):                                       # unrolled, 3 taps
        lhs = col_ref[dy:dy + ht, :, :].reshape(ht * w, 3 * p)
        d = jnp.dot(lhs.astype(jnp.bfloat16), w_ref[dy],
                    preferred_element_type=jnp.float32)
        acc = d if acc is None else acc + d

    o_ref[...] = acc.reshape(1, ht, w, p)
    st_ref[...] = _partial_stats(acc).reshape(1, 1, 2, p)


def _bn_relu_conv1x1_statsonly_kernel(y_ref, s_ref, b_ref, w_ref, st_ref):
    """Stats-only pass: o = relu(y*scale+shift) @ w, emit per-tile sum/sumsq.

    The full-width conv3 output is NOT written to HBM; stage 4 recomputes it
    from the narrow y2 tile (removes a 4*planes-channel round trip)."""
    _, ht, w, cin = y_ref.shape
    cout = w_ref.shape[1]
    h = jnp.maximum(y_ref[...].reshape(ht * w, cin) * s_ref[...] + b_ref[...], 0.0)
    o = jnp.dot(h.astype(jnp.bfloat16), w_ref[...],
                preferred_element_type=jnp.float32)
    st_ref[...] = _partial_stats(o).reshape(1, 1, 2, cout)


def _bn_relu_conv1x1_bn_add_relu_kernel(y_ref, r_ref, s2_ref, b2_ref,
                                        s3_ref, b3_ref, w_ref, o_ref):
    """Recompute conv3 and fuse the tail:
       out = relu( BN3( relu(BN2(y2)) @ w3 ) + residual )."""
    _, ht, w, p = y_ref.shape
    c4 = w_ref.shape[1]
    h = jnp.maximum(y_ref[...].reshape(ht * w, p) * s2_ref[...] + b2_ref[...], 0.0)
    y3 = jnp.dot(h.astype(jnp.bfloat16), w_ref[...],
                 preferred_element_type=jnp.float32)
    res = r_ref[...].reshape(ht * w, c4)
    out = jnp.maximum(y3 * s3_ref[...] + b3_ref[...] + res, 0.0)
    o_ref[...] = out.reshape(1, ht, w, c4).astype(o_ref.dtype)


# ---------------------------------------------------------------------------
# host-side glue
# ---------------------------------------------------------------------------
def _stats_to_scale_shift(partials, gamma, beta, count):
    """Per-tile [sum, sumsq] partials -> fused BN scale/shift (train mode)."""
    tot = jnp.sum(partials, axis=(0, 1))                    # (2, C)
    mean = tot[0] / count
    var = jnp.maximum(tot[1] / count - mean * mean, 0.0)    # biased variance
    scale = gamma * jax.lax.rsqrt(var + EPS)
    shift = beta - mean * scale
    return scale.reshape(1, -1), shift.reshape(1, -1)


def bottleneck_forward(x_nchw, params, *, row_tile=None):
    """Bottleneck forward (train-mode BN), x_nchw: (N, 4*planes, H, W) f32."""
    # NOTE: the NCHW<->NHWC transposes exist only to match the PyTorch API;
    # a real pipeline would stay NHWC end-to-end (no internal transposes here).
    x = jnp.transpose(x_nchw, (0, 2, 3, 1)).astype(jnp.float32)   # NHWC
    n, h, w, cin = x.shape
    p = params["w1"].shape[1]
    c4 = params["w3"].shape[1]
    assert cin == c4, "identity residual requires inplanes == 4 * planes"

    ht = row_tile if row_tile is not None else _pick_row_tile(h, w, max(cin, 3 * p))
    assert h % ht == 0, "row_tile must divide H"
    nh = h // ht
    grid = (n, nh)
    count = n * h * w

    # bf16 matmul weights (cast once); w2 folded so dx lives on the K axis.
    w1 = params["w1"].astype(jnp.bfloat16)                         # (Cin, P)
    w2f = params["w2"].reshape(3, 3 * p, p).astype(jnp.bfloat16)   # (3, 3P, P)
    w3 = params["w3"].astype(jnp.bfloat16)                         # (P, 4P)

    def tile_spec(c):
        return pl.BlockSpec((1, ht, w, c), lambda i, j: (i, j, 0, 0))

    def stat_spec(c):
        return pl.BlockSpec((1, 1, 2, c), lambda i, j: (i, j, 0, 0))

    def vec_spec(c):
        return pl.BlockSpec((1, c), lambda i, j: (0, 0))

    # ---- stage 1: 1x1 conv (+ BN1 partial statistics) ----------------------
    y1, st1 = pl.pallas_call(
        _conv1x1_stats_kernel,
        grid=grid,
        in_specs=[tile_spec(cin),
                  pl.BlockSpec((cin, p), lambda i, j: (0, 0))],
        out_specs=(tile_spec(p), stat_spec(p)),
        out_shape=(jax.ShapeDtypeStruct((n, h, w, p), jnp.float32),
                   jax.ShapeDtypeStruct((n, nh, 2, p), jnp.float32)),
        compiler_params=_compiler_params(),
        cost_estimate=pl.CostEstimate(
            flops=2 * count * cin * p, transcendentals=0,
            bytes_accessed=4 * count * (cin + p) + 2 * cin * p),
    )(x, w1)
    s1, b1 = _stats_to_scale_shift(st1, params["g1"], params["b1"], count)

    # ---- stage 2: BN1 + ReLU + 3x3 conv (+ BN2 partial statistics) ---------
    y2, st2 = pl.pallas_call(
        _bn_relu_conv3x3_stats_kernel,
        grid=grid,
        in_specs=[
            tile_spec(p),                                   # centre rows
            pl.BlockSpec((1, 1, w, p),                      # top halo row
                         lambda i, j: (i, jnp.maximum(j * ht - 1, 0), 0, 0)),
            pl.BlockSpec((1, 1, w, p),                      # bottom halo row
                         lambda i, j: (i, jnp.minimum((j + 1) * ht, h - 1), 0, 0)),
            vec_spec(p), vec_spec(p),
            pl.BlockSpec((3, 3 * p, p), lambda i, j: (0, 0, 0)),
        ],
        out_specs=(tile_spec(p), stat_spec(p)),
        out_shape=(jax.ShapeDtypeStruct((n, h, w, p), jnp.float32),
                   jax.ShapeDtypeStruct((n, nh, 2, p), jnp.float32)),
        scratch_shapes=[pltpu.VMEM((ht + 2, w, 3 * p), jnp.float32)],
        compiler_params=_compiler_params(),
        cost_estimate=pl.CostEstimate(
            flops=2 * count * 9 * p * p, transcendentals=0,
            bytes_accessed=4 * count * 2 * p + 2 * 9 * p * p),
    )(y1, y1, y1, s1, b1, w2f)
    s2, b2 = _stats_to_scale_shift(st2, params["g2"], params["b2"], count)

    # ---- stage 3: BN2 + ReLU + 1x1 conv -> BN3 partial statistics ONLY -----
    # (y3 itself is never written to HBM; stage 4 recomputes it.)
    st3 = pl.pallas_call(
        _bn_relu_conv1x1_statsonly_kernel,
        grid=grid,
        in_specs=[tile_spec(p), vec_spec(p), vec_spec(p),
                  pl.BlockSpec((p, c4), lambda i, j: (0, 0))],
        out_specs=stat_spec(c4),
        out_shape=jax.ShapeDtypeStruct((n, nh, 2, c4), jnp.float32),
        compiler_params=_compiler_params(),
        cost_estimate=pl.CostEstimate(
            flops=2 * count * p * c4, transcendentals=0,
            bytes_accessed=4 * count * p + 2 * p * c4 + 4 * n * nh * 2 * c4),
    )(y2, s2, b2, w3)
    s3, b3 = _stats_to_scale_shift(st3, params["g3"], params["b3"], count)

    # ---- stage 4: recompute conv3, fuse BN3 + identity residual + ReLU -----
    out = pl.pallas_call(
        _bn_relu_conv1x1_bn_add_relu_kernel,
        grid=grid,
        in_specs=[tile_spec(p), tile_spec(c4),
                  vec_spec(p), vec_spec(p), vec_spec(c4), vec_spec(c4),
                  pl.BlockSpec((p, c4), lambda i, j: (0, 0))],
        out_specs=tile_spec(c4),
        out_shape=jax.ShapeDtypeStruct((n, h, w, c4), x.dtype),
        compiler_params=_compiler_params(),
        cost_estimate=pl.CostEstimate(
            flops=2 * count * p * c4 + 3 * count * c4, transcendentals=0,
            bytes_accessed=4 * count * (p + 2 * c4) + 2 * p * c4),
    )(y2, x, s2, b2, s3, b3, w3)

    return jnp.transpose(out, (0, 3, 1, 2))                       # NHWC->NCHW


def make_params(key, inplanes, planes):
    """Conv weights stored as (cin, cout) / (kh, kw, cin, cout); bias=False.
    (PyTorch's (cout, cin, kh, kw) maps via transpose.)  BN affine = default
    init (gamma=1, beta=0)."""
    k1, k2, k3 = jax.random.split(key, 3)
    w1 = jax.random.normal(k1, (inplanes, planes), jnp.float32) * 0.1
    w2 = jax.random.normal(k2, (3, 3, planes, planes), jnp.float32) * 0.1
    w3 = jax.random.normal(k3, (planes, planes * 4), jnp.float32) * 0.1
    return dict(
        w1=w1, g1=jnp.ones((planes,), jnp.float32), b1=jnp.zeros((planes,), jnp.float32),
        w2=w2, g2=jnp.ones((planes,), jnp.float32), b2=jnp.zeros((planes,), jnp.float32),
        w3=w3, g3=jnp.ones((planes * 4,), jnp.float32), b3=jnp.zeros((planes * 4,), jnp.float32),
    )


def reference_forward(x_nchw, prm):
    """Pure-JAX reference with the same numerics (bf16 matmul inputs, f32
    accumulation, train-mode BN with biased variance)."""
    x = jnp.transpose(x_nchw, (0, 2, 3, 1)).astype(jnp.float32)
    _, H, W, _ = x.shape
    w1 = prm["w1"].astype(jnp.bfloat16)
    w2 = prm["w2"].astype(jnp.bfloat16)
    w3 = prm["w3"].astype(jnp.bfloat16)

    def bn(y, g, b):
        m = jnp.mean(y, axis=(0, 1, 2), keepdims=True)
        v = jnp.mean((y - m) ** 2, axis=(0, 1, 2), keepdims=True)
        return (y - m) * jax.lax.rsqrt(v + EPS) * g + b

    y1 = jnp.einsum("nhwc,co->nhwo", x.astype(jnp.bfloat16), w1,
                    preferred_element_type=jnp.float32)
    h1 = jax.nn.relu(bn(y1, prm["g1"], prm["b1"]))
    hp = jnp.pad(h1, ((0, 0), (1, 1), (1, 1), (0, 0)))
    y2 = jnp.zeros_like(y1)
    for dy in range(3):
        for dx in range(3):
            y2 = y2 + jnp.einsum(
                "nhwc,co->nhwo",
                hp[:, dy:dy + H, dx:dx + W, :].astype(jnp.bfloat16),
                w2[dy, dx], preferred_element_type=jnp.float32)
    h2 = jax.nn.relu(bn(y2, prm["g2"], prm["b2"]))
    y3 = jnp.einsum("nhwc,co->nhwo", h2.astype(jnp.bfloat16), w3,
                    preferred_element_type=jnp.float32)
    h3 = bn(y3, prm["g3"], prm["b3"])
    return jnp.transpose(jax.nn.relu(h3 + x), (0, 3, 1, 2))


if __name__ == "__main__":
    # Small demo: planes=32 so inplanes = 4*planes = 128 -> the block input,
    # residual and output tensors are 128-lane dense.
    planes = 32
    inplanes = planes * 4
    N, H, W = 2, 16, 16

    key = jax.random.PRNGKey(0)
    kx, kp = jax.random.split(key)
    x = jax.random.normal(kx, (N, inplanes, H, W), jnp.float32)   # NCHW
    params = make_params(kp, inplanes, planes)

    # row_tile=8 -> grid (N=2, H-tiles=2); exercises both halo boundary cases.
    fwd = jax.jit(lambda xx, pp: bottleneck_forward(xx, pp, row_tile=8))
    out = jax.block_until_ready(fwd(x, params))

    ref = reference_forward(x, params)
    assert out.shape == (N, inplanes, H, W)
    max_err = float(jnp.max(jnp.abs(out - ref)))
    assert max_err < 2e-2, f"mismatch vs reference (max abs err {max_err})"

    print("KERNEL_OK")
</pallas_src>

<mosaic_0001>
module attributes {stable_mosaic.version = 11 : i64} {
  func.func @_conv1x1_stats_kernel(%arg0: i32, %arg1: i32, %arg2: memref<1x8x16x128xf32, #tpu.memory_space<vmem>>, %arg3: memref<128x32xbf16, #tpu.memory_space<vmem>>, %arg4: memref<1x8x16x32xf32, #tpu.memory_space<vmem>>, %arg5: memref<1x1x2x32xf32, #tpu.memory_space<vmem>>) attributes {dimension_semantics = [#tpu.dimension_semantics<parallel>, #tpu.dimension_semantics<parallel>], iteration_bounds = array<i64: 2, 2>, scalar_prefetch = 0 : i64, scratch_operands = 0 : i64, tpu.core_type = #tpu.core_type<tc>, window_params = [{transform_indices = @transform_0, window_bounds = array<i64: 1, 8, 16, 128>}, {pipeline_mode = #tpu.pipeline_mode<synchronous>, transform_indices = @transform_1, window_bounds = array<i64: 128, 32>}, {transform_indices = @transform_2, window_bounds = array<i64: 1, 8, 16, 32>}, {transform_indices = @transform_3, window_bounds = array<i64: 1, 1, 2, 32>}]} {
    %c0 = arith.constant 0 : index
    %c0_0 = arith.constant 0 : index
    %c0_1 = arith.constant 0 : index
    %c0_2 = arith.constant 0 : index
    %0 = vector.load %arg2[%c0, %c0_0, %c0_1, %c0_2] : memref<1x8x16x128xf32, #tpu.memory_space<vmem>>, vector<1x8x16x128xf32>
    %1 = vector.shape_cast %0 : vector<1x8x16x128xf32> to vector<128x128xf32>
    %2 = arith.truncf %1 : vector<128x128xf32> to vector<128x128xbf16>
    %c0_3 = arith.constant 0 : index
    %c0_4 = arith.constant 0 : index
    %3 = vector.load %arg3[%c0_3, %c0_4] : memref<128x32xbf16, #tpu.memory_space<vmem>>, vector<128x32xbf16>
    %cst = arith.constant dense<0.000000e+00> : vector<128x32xf32>
    %4 = tpu.matmul %2, %3, %cst {dimension_numbers = #tpu.dot_dimension_numbers<[1], [0], [0], [1], [0, 0, 1, 1], [], []>} : vector<128x128xbf16>, vector<128x32xbf16>, vector<128x32xf32> -> vector<128x32xf32>
    %5 = vector.shape_cast %4 : vector<128x32xf32> to vector<1x8x16x32xf32>
    %c0_5 = arith.constant 0 : index
    %c0_6 = arith.constant 0 : index
    %c0_7 = arith.constant 0 : index
    %c0_8 = arith.constant 0 : index
    %6 = vector.load %arg4[%c0_5, %c0_6, %c0_7, %c0_8] : memref<1x8x16x32xf32, #tpu.memory_space<vmem>>, vector<1x8x16x32xf32>
    tpu.vector_store %arg4[%c0_5, %c0_6, %c0_7, %c0_8], %5 {strides = array<i32>} : memref<1x8x16x32xf32, #tpu.memory_space<vmem>>, vector<1x8x16x32xf32>,
    %cst_9 = arith.constant dense<0.000000e+00> : vector<32xf32>
    %7 = vector.multi_reduction <add>, %4, %cst_9 [0] : vector<128x32xf32> to vector<32xf32>
    %8 = vector.shape_cast %7 : vector<32xf32> to vector<1x32xf32>
    %9 = arith.mulf %4, %4 : vector<128x32xf32>
    %cst_10 = arith.constant dense<0.000000e+00> : vector<32xf32>
    %10 = vector.multi_reduction <add>, %9, %cst_10 [0] : vector<128x32xf32> to vector<32xf32>
    %11 = vector.shape_cast %10 : vector<32xf32> to vector<1x32xf32>
    %12 = tpu.concatenate %8, %11 in 0 : vector<1x32xf32>, vector<1x32xf32> -> vector<2x32xf32>
    %13 = vector.shape_cast %12 : vector<2x32xf32> to vector<1x1x2x32xf32>
    %c0_11 = arith.constant 0 : index
    %c0_12 = arith.constant 0 : index
    %c0_13 = arith.constant 0 : index
    %c0_14 = arith.constant 0 : index
    %14 = vector.load %arg5[%c0_11, %c0_12, %c0_13, %c0_14] : memref<1x1x2x32xf32, #tpu.memory_space<vmem>>, vector<1x1x2x32xf32>
    tpu.vector_store %arg5[%c0_11, %c0_12, %c0_13, %c0_14], %13 {strides = array<i32>} : memref<1x1x2x32xf32, #tpu.memory_space<vmem>>, vector<1x1x2x32xf32>,
    return
  }
  func.func @transform_0(%arg0: i32, %arg1: i32) -> (i32, i32, i32, i32) {
    %c0_i32 = arith.constant 0 : i32
    %c0_i32_0 = arith.constant 0 : i32
    %c0_i32_1 = arith.constant 0 : i32
    return %arg0, %arg1, %c0_i32, %c0_i32_0 : i32, i32, i32, i32
  }
  func.func @transform_1(%arg0: i32, %arg1: i32) -> (i32, i32) {
    %c0_i32 = arith.constant 0 : i32
    %c0_i32_0 = arith.constant 0 : i32
    %c0_i32_1 = arith.constant 0 : i32
    return %c0_i32, %c0_i32_0 : i32, i32
  }
  func.func @transform_2(%arg0: i32, %arg1: i32) -> (i32, i32, i32, i32) {
    %c0_i32 = arith.constant 0 : i32
    %c0_i32_0 = arith.constant 0 : i32
    %c0_i32_1 = arith.constant 0 : i32
    return %arg0, %arg1, %c0_i32, %c0_i32_0 : i32, i32, i32, i32
  }
  func.func @transform_3(%arg0: i32, %arg1: i32) -> (i32, i32, i32, i32) {
    %c0_i32 = arith.constant 0 : i32
    %c0_i32_0 = arith.constant 0 : i32
    %c0_i32_1 = arith.constant 0 : i32
    return %arg0, %arg1, %c0_i32, %c0_i32_0 : i32, i32, i32, i32
  }
}

module attributes {stable_mosaic.version = 11 : i64} {
  func.func @_bn_relu_conv1x1_statsonly_kernel(%arg0: i32, %arg1: i32, %arg2: memref<1x8x16x32xf32, #tpu.memory_space<vmem>>, %arg3: memref<1x32xf32, #tpu.memory_space<vmem>>, %arg4: memref<1x32xf32, #tpu.memory_space<vmem>>, %arg5: memref<32x128xbf16, #tpu.memory_space<vmem>>, %arg6: memref<1x1x2x128xf32, #tpu.memory_space<vmem>>) attributes {dimension_semantics = [#tpu.dimension_semantics<parallel>, #tpu.dimension_semantics<parallel>], iteration_bounds = array<i64: 2, 2>, scalar_prefetch = 0 : i64, scratch_operands = 0 : i64, tpu.core_type = #tpu.core_type<tc>, window_params = [{transform_indices = @transform_0, window_bounds = array<i64: 1, 8, 16, 32>}, {pipeline_mode = #tpu.pipeline_mode<synchronous>, transform_indices = @transform_1, window_bounds = array<i64: 1, 32>}, {pipeline_mode = #tpu.pipeline_mode<synchronous>, transform_indices = @transform_2, window_bounds = array<i64: 1, 32>}, {pipeline_mode = #tpu.pipeline_mode<synchronous>, transform_indices = @transform_3, window_bounds = array<i64: 32, 128>}, {transform_indices = @transform_4, window_bounds = array<i64: 1, 1, 2, 128>}]} {
    %c0 = arith.constant 0 : index
    %c0_0 = arith.constant 0 : index
    %c0_1 = arith.constant 0 : index
    %c0_2 = arith.constant 0 : index
    %0 = vector.load %arg2[%c0, %c0_0, %c0_1, %c0_2] : memref<1x8x16x32xf32, #tpu.memory_space<vmem>>, vector<1x8x16x32xf32>
    %1 = vector.shape_cast %0 : vector<1x8x16x32xf32> to vector<128x32xf32>
    %c0_3 = arith.constant 0 : index
    %c0_4 = arith.constant 0 : index
    %2 = vector.load %arg3[%c0_3, %c0_4] : memref<1x32xf32, #tpu.memory_space<vmem>>, vector<1x32xf32>
    %3 = vector.broadcast %2 : vector<1x32xf32> to vector<128x32xf32>
    %4 = arith.mulf %1, %3 : vector<128x32xf32>
    %c0_5 = arith.constant 0 : index
    %c0_6 = arith.constant 0 : index
    %5 = vector.load %arg4[%c0_5, %c0_6] : memref<1x32xf32, #tpu.memory_space<vmem>>, vector<1x32xf32>
    %6 = vector.broadcast %5 : vector<1x32xf32> to vector<128x32xf32>
    %7 = arith.addf %4, %6 : vector<128x32xf32>
    %cst = arith.constant 0.000000e+00 : f32
    %8 = vector.broadcast %cst : f32 to vector<128x32xf32>
    %9 = arith.maximumf %7, %8 : vector<128x32xf32>
    %10 = arith.truncf %9 : vector<128x32xf32> to vector<128x32xbf16>
    %c0_7 = arith.constant 0 : index
    %c0_8 = arith.constant 0 : index
    %11 = vector.load %arg5[%c0_7, %c0_8] : memref<32x128xbf16, #tpu.memory_space<vmem>>, vector<32x128xbf16>
    %cst_9 = arith.constant dense<0.000000e+00> : vector<128x128xf32>
    %12 = tpu.matmul %10, %11, %cst_9 {dimension_numbers = #tpu.dot_dimension_numbers<[1], [0], [0], [1], [0, 0, 1, 1], [], []>} : vector<128x32xbf16>, vector<32x128xbf16>, vector<128x128xf32> -> vector<128x128xf32>
    %cst_10 = arith.constant dense<0.000000e+00> : vector<128xf32>
    %13 = vector.multi_reduction <add>, %12, %cst_10 [0] : vector<128x128xf32> to vector<128xf32>
    %14 = vector.shape_cast %13 : vector<128xf32> to vector<1x128xf32>
    %15 = arith.mulf %12, %12 : vector<128x128xf32>
    %cst_11 = arith.constant dense<0.000000e+00> : vector<128xf32>
    %16 = vector.multi_reduction <add>, %15, %cst_11 [0] : vector<128x128xf32> to vector<128xf32>
    %17 = vector.shape_cast %16 : vector<128xf32> to vector<1x128xf32>
    %18 = tpu.concatenate %14, %17 in 0 : vector<1x128xf32>, vector<1x128xf32> -> vector<2x128xf32>
    %19 = vector.shape_cast %18 : vector<2x128xf32> to vector<1x1x2x128xf32>
    %c0_12 = arith.constant 0 : index
    %c0_13 = arith.constant 0 : index
    %c0_14 = arith.constant 0 : index
    %c0_15 = arith.constant 0 : index
    %20 = vector.load %arg6[%c0_12, %c0_13, %c0_14, %c0_15] : memref<1x1x2x128xf32, #tpu.memory_space<vmem>>, vector<1x1x2x128xf32>
    tpu.vector_store %arg6[%c0_12, %c0_13, %c0_14, %c0_15], %19 {strides = array<i32>} : memref<1x1x2x128xf32, #tpu.memory_space<vmem>>, vector<1x1x2x128xf32>,
    return
  }
  func.func @transform_0(%arg0: i32, %arg1: i32) -> (i32, i32, i32, i32) {
    %c0_i32 = arith.constant 0 : i32
    %c0_i32_0 = arith.constant 0 : i32
    %c0_i32_1 = arith.constant 0 : i32
    return %arg0, %arg1, %c0_i32, %c0_i32_0 : i32, i32, i32, i32
  }
  func.func @transform_1(%arg0: i32, %arg1: i32) -> (i32, i32) {
    %c0_i32 = arith.constant 0 : i32
    %c0_i32_0 = arith.constant 0 : i32
    %c0_i32_1 = arith.constant 0 : i32
    return %c0_i32, %c0_i32_0 : i32, i32
  }
  func.func @transform_2(%arg0: i32, %arg1: i32) -> (i32, i32) {
    %c0_i32 = arith.constant 0 : i32
    %c0_i32_0 = arith.constant 0 : i32
    %c0_i32_1 = arith.constant 0 : i32
    return %c0_i32, %c0_i32_0 : i32, i32
  }
  func.func @transform_3(%arg0: i32, %arg1: i32) -> (i32, i32) {
    %c0_i32 = arith.constant 0 : i32
    %c0_i32_0 = arith.constant 0 : i32
    %c0_i32_1 = arith.constant 0 : i32
    return %c0_i32, %c0_i32_0 : i32, i32
  }
  func.func @transform_4(%arg0: i32, %arg1: i32) -> (i32, i32, i32, i32) {
    %c0_i32 = arith.constant 0 : i32
    %c0_i32_0 = arith.constant 0 : i32
    %c0_i32_1 = arith.constant 0 : i32
    return %arg0, %arg1, %c0_i32, %c0_i32_0 : i32, i32, i32, i32
  }
}

module attributes {stable_mosaic.version = 11 : i64} {
  func.func @_bn_relu_conv3x3_stats_kernel(%arg0: i32, %arg1: i32, %arg2: memref<1x8x16x32xf32, #tpu.memory_space<vmem>>, %arg3: memref<1x1x16x32xf32, #tpu.memory_space<vmem>>, %arg4: memref<1x1x16x32xf32, #tpu.memory_space<vmem>>, %arg5: memref<1x32xf32, #tpu.memory_space<vmem>>, %arg6: memref<1x32xf32, #tpu.memory_space<vmem>>, %arg7: memref<3x96x32xbf16, #tpu.memory_space<vmem>>, %arg8: memref<1x8x16x32xf32, #tpu.memory_space<vmem>>, %arg9: memref<1x1x2x32xf32, #tpu.memory_space<vmem>>, %arg10: memref<10x16x96xf32, #tpu.memory_space<vmem>>) attributes {dimension_semantics = [#tpu.dimension_semantics<parallel>, #tpu.dimension_semantics<parallel>], iteration_bounds = array<i64: 2, 2>, scalar_prefetch = 0 : i64, scratch_operands = 1 : i64, tpu.core_type = #tpu.core_type<tc>, window_params = [{transform_indices = @transform_0, window_bounds = array<i64: 1, 8, 16, 32>}, {transform_indices = @transform_1, window_bounds = array<i64: 1, 1, 16, 32>}, {transform_indices = @transform_2, window_bounds = array<i64: 1, 1, 16, 32>}, {pipeline_mode = #tpu.pipeline_mode<synchronous>, transform_indices = @transform_3, window_bounds = array<i64: 1, 32>}, {pipeline_mode = #tpu.pipeline_mode<synchronous>, transform_indices = @transform_4, window_bounds = array<i64: 1, 32>}, {pipeline_mode = #tpu.pipeline_mode<synchronous>, transform_indices = @transform_5, window_bounds = array<i64: 3, 96, 32>}, {transform_indices = @transform_6, window_bounds = array<i64: 1, 8, 16, 32>}, {transform_indices = @transform_7, window_bounds = array<i64: 1, 1, 2, 32>}]} {
    %c0 = arith.constant 0 : index
    %c0_0 = arith.constant 0 : index
    %0 = vector.load %arg5[%c0, %c0_0] : memref<1x32xf32, #tpu.memory_space<vmem>>, vector<1x32xf32>
    %c0_1 = arith.constant 0 : index
    %c0_2 = arith.constant 0 : index
    %1 = vector.load %arg6[%c0_1, %c0_2] : memref<1x32xf32, #tpu.memory_space<vmem>>, vector<1x32xf32>
    %c0_3 = arith.constant 0 : index
    %c0_4 = arith.constant 0 : index
    %c0_5 = arith.constant 0 : index
    %c0_6 = arith.constant 0 : index
    %2 = vector.load %arg2[%c0_3, %c0_4, %c0_5, %c0_6] : memref<1x8x16x32xf32, #tpu.memory_space<vmem>>, vector<1x8x16x32xf32>
    %3 = vector.shape_cast %2 : vector<1x8x16x32xf32> to vector<8x16x32xf32>
    %4 = vector.shape_cast %0 : vector<1x32xf32> to vector<1x1x32xf32>
    %5 = vector.broadcast %4 : vector<1x1x32xf32> to vector<8x16x32xf32>
    %6 = arith.mulf %3, %5 : vector<8x16x32xf32>
    %7 = vector.shape_cast %1 : vector<1x32xf32> to vector<1x1x32xf32>
    %8 = vector.broadcast %7 : vector<1x1x32xf32> to vector<8x16x32xf32>
    %9 = arith.addf %6, %8 : vector<8x16x32xf32>
    %cst = arith.constant 0.000000e+00 : f32
    %10 = vector.broadcast %cst : f32 to vector<8x16x32xf32>
    %11 = arith.maximumf %9, %10 : vector<8x16x32xf32>
    %c0_7 = arith.constant 0 : index
    %c0_8 = arith.constant 0 : index
    %c0_9 = arith.constant 0 : index
    %c0_10 = arith.constant 0 : index
    %12 = vector.load %arg3[%c0_7, %c0_8, %c0_9, %c0_10] : memref<1x1x16x32xf32, #tpu.memory_space<vmem>>, vector<1x1x16x32xf32>
    %13 = vector.shape_cast %12 : vector<1x1x16x32xf32> to vector<1x16x32xf32>
    %14 = vector.shape_cast %0 : vector<1x32xf32> to vector<1x1x32xf32>
    %15 = vector.broadcast %14 : vector<1x1x32xf32> to vector<1x16x32xf32>
    %16 = arith.mulf %13, %15 : vector<1x16x32xf32>
    %17 = vector.shape_cast %1 : vector<1x32xf32> to vector<1x1x32xf32>
    %18 = vector.broadcast %17 : vector<1x1x32xf32> to vector<1x16x32xf32>
    %19 = arith.addf %16, %18 : vector<1x16x32xf32>
    %cst_11 = arith.constant 0.000000e+00 : f32
    %20 = vector.broadcast %cst_11 : f32 to vector<1x16x32xf32>
    %21 = arith.maximumf %19, %20 : vector<1x16x32xf32>
    %c0_12 = arith.constant 0 : index
    %c0_13 = arith.constant 0 : index
    %c0_14 = arith.constant 0 : index
    %c0_15 = arith.constant 0 : index
    %22 = vector.load %arg4[%c0_12, %c0_13, %c0_14, %c0_15] : memref<1x1x16x32xf32, #tpu.memory_space<vmem>>, vector<1x1x16x32xf32>
    %23 = vector.shape_cast %22 : vector<1x1x16x32xf32> to vector<1x16x32xf32>
    %24 = vector.shape_cast %0 : vector<1x32xf32> to vector<1x1x32xf32>
    %25 = vector.broadcast %24 : vector<1x1x32xf32> to vector<1x16x32xf32>
    %26 = arith.mulf %23, %25 : vector<1x16x32xf32>
    %27 = vector.shape_cast %1 : vector<1x32xf32> to vector<1x1x32xf32>
    %28 = vector.broadcast %27 : vector<1x1x32xf32> to vector<1x16x32xf32>
    %29 = arith.addf %26, %28 : vector<1x16x32xf32>
    %cst_16 = arith.constant 0.000000e+00 : f32
    %30 = vector.broadcast %cst_16 : f32 to vector<1x16x32xf32>
    %31 = arith.maximumf %29, %30 : vector<1x16x32xf32>
    %c0_i32 = arith.constant 0 : i32
    %32 = arith.cmpi sgt, %arg1, %c0_i32 : i32
    %cst_17 = arith.constant 0.000000e+00 : f32
    %33 = vector.broadcast %cst_17 : f32 to vector<1x16x32xf32>
    %34 = arith.select %32, %21, %33 : vector<1x16x32xf32>
    %c1_i32 = arith.constant 1 : i32
    %35 = arith.cmpi slt, %arg1, %c1_i32 : i32
    %cst_18 = arith.constant 0.000000e+00 : f32
    %36 = vector.broadcast %cst_18 : f32 to vector<1x16x32xf32>
    %37 = arith.select %35, %31, %36 : vector<1x16x32xf32>
    %38 = tpu.concatenate %34, %11, %37 in 0 : vector<1x16x32xf32>, vector<8x16x32xf32>, vector<1x16x32xf32> -> vector<10x16x32xf32>
    %cst_19 = arith.constant 0.000000e+00 : f32
    %39 = vector.broadcast %cst_19 : f32 to vector<10x1x32xf32>
    %c0_20 = arith.constant 0 : index
    %c0_21 = arith.constant 0 : index
    %c32 = arith.constant 32 : index
    %40 = vector.load %arg10[%c0_20, %c0_21, %c32] : memref<10x16x96xf32, #tpu.memory_space<vmem>>, vector<10x16x32xf32>
    tpu.vector_store %arg10[%c0_20, %c0_21, %c32], %38 {strides = array<i32>} : memref<10x16x96xf32, #tpu.memory_space<vmem>>, vector<10x16x32xf32>,
    %41 = vector.extract_strided_slice %38 {offsets = [0, 0, 0], sizes = [10, 15, 32], strides = [1, 1, 1]} : vector<10x16x32xf32> to vector<10x15x32xf32>
    %c0_22 = arith.constant 0 : index
    %c1 = arith.constant 1 : index
    %c0_23 = arith.constant 0 : index
    %42 = vector.load %arg10[%c0_22, %c1, %c0_23] : memref<10x16x96xf32, #tpu.memory_space<vmem>>, vector<10x15x32xf32>
    tpu.vector_store %arg10[%c0_22, %c1, %c0_23], %41 {strides = array<i32>} : memref<10x16x96xf32, #tpu.memory_space<vmem>>, vector<10x15x32xf32>,
    %c0_24 = arith.constant 0 : index
    %c0_25 = arith.constant 0 : index
    %c0_26 = arith.constant 0 : index
    %43 = vector.load %arg10[%c0_24, %c0_25, %c0_26] : memref<10x16x96xf32, #tpu.memory_space<vmem>>, vector<10x1x32xf32>
    tpu.vector_store %arg10[%c0_24, %c0_25, %c0_26], %39 {strides = array<i32>} : memref<10x16x96xf32, #tpu.memory_space<vmem>>, vector<10x1x32xf32>,
    %44 = vector.extract_strided_slice %38 {offsets = [0, 1, 0], sizes = [10, 15, 32], strides = [1, 1, 1]} : vector<10x16x32xf32> to vector<10x15x32xf32>
    %c0_27 = arith.constant 0 : index
    %c0_28 = arith.constant 0 : index
    %c64 = arith.constant 64 : index
    %45 = vector.load %arg10[%c0_27, %c0_28, %c64] : memref<10x16x96xf32, #tpu.memory_space<vmem>>, vector<10x15x32xf32>
    tpu.vector_store %arg10[%c0_27, %c0_28, %c64], %44 {strides = array<i32>} : memref<10x16x96xf32, #tpu.memory_space<vmem>>, vector<10x15x32xf32>,
    %c0_29 = arith.constant 0 : index
    %c15 = arith.constant 15 : index
    %c64_30 = arith.constant 64 : index
    %46 = vector.load %arg10[%c0_29, %c15, %c64_30] : memref<10x16x96xf32, #tpu.memory_space<vmem>>, vector<10x1x32xf32>
    tpu.vector_store %arg10[%c0_29, %c15, %c64_30], %39 {strides = array<i32>} : memref<10x16x96xf32, #tpu.memory_space<vmem>>, vector<10x1x32xf32>,
    %c0_31 = arith.constant 0 : index
    %c0_32 = arith.constant 0 : index
    %c0_33 = arith.constant 0 : index
    %47 = vector.load %arg10[%c0_31, %c0_32, %c0_33] : memref<10x16x96xf32, #tpu.memory_space<vmem>>, vector<8x16x96xf32>
    %48 = vector.shape_cast %47 : vector<8x16x96xf32> to vector<128x96xf32>
    %49 = arith.truncf %48 : vector<128x96xf32> to vector<128x96xbf16>
    %c0_34 = arith.constant 0 : index
    %c0_35 = arith.constant 0 : index
    %c0_36 = arith.constant 0 : index
    %50 = vector.load %arg7[%c0_34, %c0_35, %c0_36] : memref<3x96x32xbf16, #tpu.memory_space<vmem>>, vector<1x96x32xbf16>
    %51 = vector.shape_cast %50 : vector<1x96x32xbf16> to vector<96x32xbf16>
    %cst_37 = arith.constant dense<0.000000e+00> : vector<128x32xf32>
    %52 = tpu.matmul %49, %51, %cst_37 {dimension_numbers = #tpu.dot_dimension_numbers<[1], [0], [0], [1], [0, 0, 1, 1], [], []>} : vector<128x96xbf16>, vector<96x32xbf16>, vector<128x32xf32> -> vector<128x32xf32>
    %c1_38 = arith.constant 1 : index
    %c0_39 = arith.constant 0 : index
    %c0_40 = arith.constant 0 : index
    %53 = vector.load %arg10[%c1_38, %c0_39, %c0_40] : memref<10x16x96xf32, #tpu.memory_space<vmem>>, vector<8x16x96xf32>
    %54 = vector.shape_cast %53 : vector<8x16x96xf32> to vector<128x96xf32>
    %55 = arith.truncf %54 : vector<128x96xf32> to vector<128x96xbf16>
    %c1_41 = arith.constant 1 : index
    %c0_42 = arith.constant 0 : index
    %c0_43 = arith.constant 0 : index
    %56 = vector.load %arg7[%c1_41, %c0_42, %c0_43] : memref<3x96x32xbf16, #tpu.memory_space<vmem>>, vector<1x96x32xbf16>
    %57 = vector.shape_cast %56 : vector<1x96x32xbf16> to vector<96x32xbf16>
    %cst_44 = arith.constant dense<0.000000e+00> : vector<128x32xf32>
    %58 = tpu.matmul %55, %57, %cst_44 {dimension_numbers = #tpu.dot_dimension_numbers<[1], [0], [0], [1], [0, 0, 1, 1], [], []>} : vector<128x96xbf16>, vector<96x32xbf16>, vector<128x32xf32> -> vector<128x32xf32>
    %59 = arith.addf %52, %58 : vector<128x32xf32>
    %c2 = arith.constant 2 : index
    %c0_45 = arith.constant 0 : index
    %c0_46 = arith.constant 0 : index
    %60 = vector.load %arg10[%c2, %c0_45, %c0_46] : memref<10x16x96xf32, #tpu.memory_space<vmem>>, vector<8x16x96xf32>
    %61 = vector.shape_cast %60 : vector<8x16x96xf32> to vector<128x96xf32>
    %62 = arith.truncf %61 : vector<128x96xf32> to vector<128x96xbf16>
    %c2_47 = arith.constant 2 : index
    %c0_48 = arith.constant 0 : index
    %c0_49 = arith.constant 0 : index
    %63 = vector.load %arg7[%c2_47, %c0_48, %c0_49] : memref<3x96x32xbf16, #tpu.memory_space<vmem>>, vector<1x96x32xbf16>
    %64 = vector.shape_cast %63 : vector<1x96x32xbf16> to vector<96x32xbf16>
    %cst_50 = arith.constant dense<0.000000e+00> : vector<128x32xf32>
    %65 = tpu.matmul %62, %64, %cst_50 {dimension_numbers = #tpu.dot_dimension_numbers<[1], [0], [0], [1], [0, 0, 1, 1], [], []>} : vector<128x96xbf16>, vector<96x32xbf16>, vector<128x32xf32> -> vector<128x32xf32>
    %66 = arith.addf %59, %65 : vector<128x32xf32>
    %67 = vector.shape_cast %66 : vector<128x32xf32> to vector<1x8x16x32xf32>
    %c0_51 = arith.constant 0 : index
    %c0_52 = arith.constant 0 : index
    %c0_53 = arith.constant 0 : index
    %c0_54 = arith.constant 0 : index
    %68 = vector.load %arg8[%c0_51, %c0_52, %c0_53, %c0_54] : memref<1x8x16x32xf32, #tpu.memory_space<vmem>>, vector<1x8x16x32xf32>
    tpu.vector_store %arg8[%c0_51, %c0_52, %c0_53, %c0_54], %67 {strides = array<i32>} : memref<1x8x16x32xf32, #tpu.memory_space<vmem>>, vector<1x8x16x32xf32>,
    %cst_55 = arith.constant dense<0.000000e+00> : vector<32xf32>
    %69 = vector.multi_reduction <add>, %66, %cst_55 [0] : vector<128x32xf32> to vector<32xf32>
    %70 = vector.shape_cast %69 : vector<32xf32> to vector<1x32xf32>
    %71 = arith.mulf %66, %66 : vector<128x32xf32>
    %cst_56 = arith.constant dense<0.000000e+00> : vector<32xf32>
    %72 = vector.multi_reduction <add>, %71, %cst_56 [0] : vector<128x32xf32> to vector<32xf32>
    %73 = vector.shape_cast %72 : vector<32xf32> to vector<1x32xf32>
    %74 = tpu.concatenate %70, %73 in 0 : vector<1x32xf32>, vector<1x32xf32> -> vector<2x32xf32>
    %75 = vector.shape_cast %74 : vector<2x32xf32> to vector<1x1x2x32xf32>
    %c0_57 = arith.constant 0 : index
    %c0_58 = arith.constant 0 : index
    %c0_59 = arith.constant 0 : index
    %c0_60 = arith.constant 0 : index
    %76 = vector.load %arg9[%c0_57, %c0_58, %c0_59, %c0_60] : memref<1x1x2x32xf32, #tpu.memory_space<vmem>>, vector<1x1x2x32xf32>
    tpu.vector_store %arg9[%c0_57, %c0_58, %c0_59, %c0_60], %75 {strides = array<i32>} : memref<1x1x2x32xf32, #tpu.memory_space<vmem>>, vector<1x1x2x32xf32>,
    return
  }
  func.func @transform_0(%arg0: i32, %arg1: i32) -> (i32, i32, i32, i32) {
    %c0_i32 = arith.constant 0 : i32
    %c0_i32_0 = arith.constant 0 : i32
    %c0_i32_1 = arith.constant 0 : i32
    return %arg0, %arg1, %c0_i32, %c0_i32_0 : i32, i32, i32, i32
  }
  func.func @transform_1(%arg0: i32, %arg1: i32) -> (i32, i32, i32, i32) {
    %c8_i32 = arith.constant 8 : i32
    %0 = arith.muli %arg1, %c8_i32 : i32
    %c1_i32 = arith.constant 1 : i32
    %1 = arith.subi %0, %c1_i32 : i32
    %c0_i32 = arith.constant 0 : i32
    %2 = arith.maxsi %1, %c0_i32 : i32
    %c0_i32_0 = arith.constant 0 : i32
    %c0_i32_1 = arith.constant 0 : i32
    %c0_i32_2 = arith.constant 0 : i32
    return %arg0, %2, %c0_i32_0, %c0_i32_1 : i32, i32, i32, i32
  }
  func.func @transform_2(%arg0: i32, %arg1: i32) -> (i32, i32, i32, i32) {
    %c1_i32 = arith.constant 1 : i32
    %0 = arith.addi %arg1, %c1_i32 : i32
    %c8_i32 = arith.constant 8 : i32
    %1 = arith.muli %0, %c8_i32 : i32
    %c15_i32 = arith.constant 15 : i32
    %2 = arith.minsi %1, %c15_i32 : i32
    %c0_i32 = arith.constant 0 : i32
    %c0_i32_0 = arith.constant 0 : i32
    %c0_i32_1 = arith.constant 0 : i32
    return %arg0, %2, %c0_i32, %c0_i32_0 : i32, i32, i32, i32
  }
  func.func @transform_3(%arg0: i32, %arg1: i32) -> (i32, i32) {
    %c0_i32 = arith.constant 0 : i32
    %c0_i32_0 = arith.constant 0 : i32
    %c0_i32_1 = arith.constant 0 : i32
    return %c0_i32, %c0_i32_0 : i32, i32
  }
  func.func @transform_4(%arg0: i32, %arg1: i32) -> (i32, i32) {
    %c0_i32 = arith.constant 0 : i32
    %c0_i32_0 = arith.constant 0 : i32
    %c0_i32_1 = arith.constant 0 : i32
    return %c0_i32, %c0_i32_0 : i32, i32
  }
  func.func @transform_5(%arg0: i32, %arg1: i32) -> (i32, i32, i32) {
    %c0_i32 = arith.constant 0 : i32
    %c0_i32_0 = arith.constant 0 : i32
    %c0_i32_1 = arith.constant 0 : i32
    %c0_i32_2 = arith.constant 0 : i32
    return %c0_i32, %c0_i32_0, %c0_i32_1 : i32, i32, i32
  }
  func.func @transform_6(%arg0: i32, %arg1: i32) -> (i32, i32, i32, i32) {
    %c0_i32 = arith.constant 0 : i32
    %c0_i32_0 = arith.constant 0 : i32
    %c0_i32_1 = arith.constant 0 : i32
    return %arg0, %arg1, %c0_i32, %c0_i32_0 : i32, i32, i32, i32
  }
  func.func @transform_7(%arg0: i32, %arg1: i32) -> (i32, i32, i32, i32) {
    %c0_i32 = arith.constant 0 : i32
    %c0_i32_0 = arith.constant 0 : i32
    %c0_i32_1 = arith.constant 0 : i32
    return %arg0, %arg1, %c0_i32, %c0_i32_0 : i32, i32, i32, i32
  }
}

module attributes {stable_mosaic.version = 11 : i64} {
  func.func @_bn_relu_conv1x1_bn_add_relu_kernel(%arg0: i32, %arg1: i32, %arg2: memref<1x8x16x32xf32, #tpu.memory_space<vmem>>, %arg3: memref<1x8x16x128xf32, #tpu.memory_space<vmem>>, %arg4: memref<1x32xf32, #tpu.memory_space<vmem>>, %arg5: memref<1x32xf32, #tpu.memory_space<vmem>>, %arg6: memref<1x128xf32, #tpu.memory_space<vmem>>, %arg7: memref<1x128xf32, #tpu.memory_space<vmem>>, %arg8: memref<32x128xbf16, #tpu.memory_space<vmem>>, %arg9: memref<1x8x16x128xf32, #tpu.memory_space<vmem>>) attributes {dimension_semantics = [#tpu.dimension_semantics<parallel>, #tpu.dimension_semantics<parallel>], iteration_bounds = array<i64: 2, 2>, scalar_prefetch = 0 : i64, scratch_operands = 0 : i64, tpu.core_type = #tpu.core_type<tc>, window_params = [{transform_indices = @transform_0, window_bounds = array<i64: 1, 8, 16, 32>}, {transform_indices = @transform_1, window_bounds = array<i64: 1, 8, 16, 128>}, {pipeline_mode = #tpu.pipeline_mode<synchronous>, transform_indices = @transform_2, window_bounds = array<i64: 1, 32>}, {pipeline_mode = #tpu.pipeline_mode<synchronous>, transform_indices = @transform_3, window_bounds = array<i64: 1, 32>}, {pipeline_mode = #tpu.pipeline_mode<synchronous>, transform_indices = @transform_4, window_bounds = array<i64: 1, 128>}, {pipeline_mode = #tpu.pipeline_mode<synchronous>, transform_indices = @transform_5, window_bounds = array<i64: 1, 128>}, {pipeline_mode = #tpu.pipeline_mode<synchronous>, transform_indices = @transform_6, window_bounds = array<i64: 32, 128>}, {transform_indices = @transform_7, window_bounds = array<i64: 1, 8, 16, 128>}]} {
    %c0 = arith.constant 0 : index
    %c0_0 = arith.constant 0 : index
    %c0_1 = arith.constant 0 : index
    %c0_2 = arith.constant 0 : index
    %0 = vector.load %arg2[%c0, %c0_0, %c0_1, %c0_2] : memref<1x8x16x32xf32, #tpu.memory_space<vmem>>, vector<1x8x16x32xf32>
    %1 = vector.shape_cast %0 : vector<1x8x16x32xf32> to vector<128x32xf32>
    %c0_3 = arith.constant 0 : index
    %c0_4 = arith.constant 0 : index
    %2 = vector.load %arg4[%c0_3, %c0_4] : memref<1x32xf32, #tpu.memory_space<vmem>>, vector<1x32xf32>
    %3 = vector.broadcast %2 : vector<1x32xf32> to vector<128x32xf32>
    %4 = arith.mulf %1, %3 : vector<128x32xf32>
    %c0_5 = arith.constant 0 : index
    %c0_6 = arith.constant 0 : index
    %5 = vector.load %arg5[%c0_5, %c0_6] : memref<1x32xf32, #tpu.memory_space<vmem>>, vector<1x32xf32>
    %6 = vector.broadcast %5 : vector<1x32xf32> to vector<128x32xf32>
    %7 = arith.addf %4, %6 : vector<128x32xf32>
    %cst = arith.constant 0.000000e+00 : f32
    %8 = vector.broadcast %cst : f32 to vector<128x32xf32>
    %9 = arith.maximumf %7, %8 : vector<128x32xf32>
    %10 = arith.truncf %9 : vector<128x32xf32> to vector<128x32xbf16>
    %c0_7 = arith.constant 0 : index
    %c0_8 = arith.constant 0 : index
    %11 = vector.load %arg8[%c0_7, %c0_8] : memref<32x128xbf16, #tpu.memory_space<vmem>>, vector<32x128xbf16>
    %cst_9 = arith.constant dense<0.000000e+00> : vector<128x128xf32>
    %12 = tpu.matmul %10, %11, %cst_9 {dimension_numbers = #tpu.dot_dimension_numbers<[1], [0], [0], [1], [0, 0, 1, 1], [], []>} : vector<128x32xbf16>, vector<32x128xbf16>, vector<128x128xf32> -> vector<128x128xf32>
    %c0_10 = arith.constant 0 : index
    %c0_11 = arith.constant 0 : index
    %c0_12 = arith.constant 0 : index
    %c0_13 = arith.constant 0 : index
    %13 = vector.load %arg3[%c0_10, %c0_11, %c0_12, %c0_13] : memref<1x8x16x128xf32, #tpu.memory_space<vmem>>, vector<1x8x16x128xf32>
    %14 = vector.shape_cast %13 : vector<1x8x16x128xf32> to vector<128x128xf32>
    %c0_14 = arith.constant 0 : index
    %c0_15 = arith.constant 0 : index
    %15 = vector.load %arg6[%c0_14, %c0_15] : memref<1x128xf32, #tpu.memory_space<vmem>>, vector<1x128xf32>
    %16 = vector.broadcast %15 : vector<1x128xf32> to vector<128x128xf32>
    %17 = arith.mulf %12, %16 : vector<128x128xf32>
    %c0_16 = arith.constant 0 : index
    %c0_17 = arith.constant 0 : index
    %18 = vector.load %arg7[%c0_16, %c0_17] : memref<1x128xf32, #tpu.memory_space<vmem>>, vector<1x128xf32>
    %19 = vector.broadcast %18 : vector<1x128xf32> to vector<128x128xf32>
    %20 = arith.addf %17, %19 : vector<128x128xf32>
    %21 = arith.addf %20, %14 : vector<128x128xf32>
    %cst_18 = arith.constant 0.000000e+00 : f32
    %22 = vector.broadcast %cst_18 : f32 to vector<128x128xf32>
    %23 = arith.maximumf %21, %22 : vector<128x128xf32>
    %24 = vector.shape_cast %23 : vector<128x128xf32> to vector<1x8x16x128xf32>
    %c0_19 = arith.constant 0 : index
    %c0_20 = arith.constant 0 : index
    %c0_21 = arith.constant 0 : index
    %c0_22 = arith.constant 0 : index
    %25 = vector.load %arg9[%c0_19, %c0_20, %c0_21, %c0_22] : memref<1x8x16x128xf32, #tpu.memory_space<vmem>>, vector<1x8x16x128xf32>
    tpu.vector_store %arg9[%c0_19, %c0_20, %c0_21, %c0_22], %24 {strides = array<i32>} : memref<1x8x16x128xf32, #tpu.memory_space<vmem>>, vector<1x8x16x128xf32>,
    return
  }
  func.func @transform_0(%arg0: i32, %arg1: i32) -> (i32, i32, i32, i32) {
    %c0_i32 = arith.constant 0 : i32
    %c0_i32_0 = arith.constant 0 : i32
    %c0_i32_1 = arith.constant 0 : i32
    return %arg0, %arg1, %c0_i32, %c0_i32_0 : i32, i32, i32, i32
  }
  func.func @transform_1(%arg0: i32, %arg1: i32) -> (i32, i32, i32, i32) {
    %c0_i32 = arith.constant 0 : i32
    %c0_i32_0 = arith.constant 0 : i32
    %c0_i32_1 = arith.constant 0 : i32
    return %arg0, %arg1, %c0_i32, %c0_i32_0 : i32, i32, i32, i32
  }
  func.func @transform_2(%arg0: i32, %arg1: i32) -> (i32, i32) {
    %c0_i32 = arith.constant 0 : i32
    %c0_i32_0 = arith.constant 0 : i32
    %c0_i32_1 = arith.constant 0 : i32
    return %c0_i32, %c0_i32_0 : i32, i32
  }
  func.func @transform_3(%arg0: i32, %arg1: i32) -> (i32, i32) {
    %c0_i32 = arith.constant 0 : i32
    %c0_i32_0 = arith.constant 0 : i32
    %c0_i32_1 = arith.constant 0 : i32
    return %c0_i32, %c0_i32_0 : i32, i32
  }
  func.func @transform_4(%arg0: i32, %arg1: i32) -> (i32, i32) {
    %c0_i32 = arith.constant 0 : i32
    %c0_i32_0 = arith.constant 0 : i32
    %c0_i32_1 = arith.constant 0 : i32
    return %c0_i32, %c0_i32_0 : i32, i32
  }
  func.func @transform_5(%arg0: i32, %arg1: i32) -> (i32, i32) {
    %c0_i32 = arith.constant 0 : i32
    %c0_i32_0 = arith.constant 0 : i32
    %c0_i32_1 = arith.constant 0 : i32
    return %c0_i32, %c0_i32_0 : i32, i32
  }
  func.func @transform_6(%arg0: i32, %arg1: i32) -> (i32, i32) {
    %c0_i32 = arith.constant 0 : i32
    %c0_i32_0 = arith.constant 0 : i32
    %c0_i32_1 = arith.constant 0 : i32
    return %c0_i32, %c0_i32_0 : i32, i32
  }
  func.func @transform_7(%arg0: i32, %arg1: i32) -> (i32, i32, i32, i32) {
    %c0_i32 = arith.constant 0 : i32
    %c0_i32_0 = arith.constant 0 : i32
    %c0_i32_1 = arith.constant 0 : i32
    return %arg0, %arg1, %c0_i32, %c0_i32_0 : i32, i32, i32, i32
  }
}

</mosaic_0001>

<bundles_post_ra>
// kernel: _lambda_.4
= control target key start
LH: loop header
LB: loop body
LE: loop exit
PB: predicated region body
PF: predicated region fallthrough
CT: control target
= control target key end

     0   :  { %9 = vsyncpa [#allocation3], 0  ;;  %s1182_s0 = inlined_call_operand.hbm [shape: f32[2,16,16,128], index: 0, kind: input, shape index: {}]   ;;  %s1183_s1 = inlined_call_operand.vmem [shape: bf16[128,32], index: 1, kind: input, shape index: {}]   ;;  %s1184_s2 = inlined_call_operand.vmem [shape: f32[2,16,16,32], index: 2, kind: output, shape index: {0}]   ;;  %s1185_s3 = inlined_call_operand.vmem [shape: f32[2,2,2,32], index: 3, kind: output, shape index: {1}]  }
   0x1   :  { %11 = vsyncpa [#allocation3 + $0x1], 0  ;;  %s921_s12 = smov 0   ;;  %s923_s13 = smov 0  }
   0x2   :  { %s925_s14 = smov 0   ;;  %s927_s15 = smov 0  }
   0x3   :  { %s929_s16 = smov 0   ;;  %s931_s17 = smov 0  }
   0x4   :  { %s933_s18 = smov 0   ;;  %s935_s19 = smov 0  }
   0x5 LB: > { %s644_s20 = sadd.s32 4294967295, %s897_s19   ;;  %s26_s21 = sadd.s32 1, %s889_s17  ;;  %s897_s19 = sphi %s935_s19, %s17_s19   ;;  %s893_s18 = sphi %s933_s18, %s1194_s18   ;;  %s889_s17 = sphi %s931_s17, %s1193_s17   ;;  %s885_s16 = sphi %s929_s16, %s1192_s16   ;;  %s881_s15 = sphi %s927_s15, %s1191_s15   ;;  %s877_s14 = sphi %s925_s14, %s1190_s14   ;;  %s873_s13 = sphi %s923_s13, %s1189_s13   ;;  %s869_s12 = sphi %s921_s12, %s1188_s12  }
   0x6   : > { %p27_p0 = scmp.ge.s32.totalorder %s26_s21, 2  ;;  %s29_s22 = sadd.s32 1, %s893_s18 }
   0x7   : > { %s38_s23 = sadd.s32 1, %s877_s14  ;;  %p45_p1 = scmp.ne.s32.totalorder %s877_s14, %s873_s13 }
   0x8   : > { %s1196_s21 = smov (%p27_p0, %s26_s21), 0  ;;  %s1198_s22 = smov (!%p27_p0, %s29_s22), %s893_s18 }
   0x9   : > { %s34_s24 = ssub.s32 %s889_s17, %s1196_s21  ;;  %p46_p2 = scmp.eq.s32.totalorder %s897_s19, 0 }
   0xa   : > { %p31_p3 = scmp.ge.s32.totalorder %s1198_s22, 2  ;;  %p51_p4 = scmp.ne.s32.totalorder %s873_s13, %s869_s12 }
   0xb   : > { %p972_p5 = por %p46_p2, %p45_p1  ;;  %p52_p6 = scmp.eq.s32.totalorder %s644_s20, 0 }
   0xc   : > { %s1200_s22 = smov (%p31_p3, %s1198_s22), 0  ;;  %p734_p8 = scmp.lt.s32.totalorder %s897_s19, 4 }
   0xd   : > { %p978_p7 = por %p52_p6, %p51_p4  ;;  %s33_s27 = ssub.s32 %s893_s18, %s1200_s22 }
   0xe   : > { %s35_s28 = sor.u32 %s34_s24, %s33_s27  ;;  %s155_s29 = sand.u32 1, %s877_s14  }
   0xf   : > { %p36_p9 = scmp.eq.s32.totalorder %s35_s28, 0  ;;  %s648_s30 = sshll.u32 %s155_s29, 7 }
  0x10   : > { %s695_s4 = sshll.u32 %s889_s17, 4  ;;  %s651_s6 = sshll.u32 %s893_s18, 5 }
  0x11   : > { %s988_s5 = scalar_select %p36_p9, %s877_s14, %s38_s23  }
  0x12   : > { %s165_s7 = sadd.s32 %s695_s4, %s651_s6  ;;  %s159_s8 = scalar_lea.vmem [#allocation2], %s648_s30 }
  0x13   : > { %s170_s9 = sshll.u32 %s159_s8, 4  ;;  %s652_s10 = sshll.u32 %s165_s7, 3  ;;  %s171_s9 = int_to_ptr.vmem [resolvable:$true] %s170_s9 }
  0x14   : > { %s167_s20 = scalar_lea.hbm %s1182_s0, %s652_s10  ;;  %p731_p10 = pnand %p734_p8, %p972_p5 }
  0x15   : > { %s168_s24 = sshll.u32 %s167_s20, 4  ;;  %p653_p11 = scmp.ge.s32.totalorder %s897_s19, 1  ;;  %s169_s24 = int_to_ptr.hbm [resolvable:$true] %s168_s24 }
  0x16   : > { %s156_s27 = scalar_lea.sflag [#allocation3], %s155_s29  ;;  %s899_s23 = smov 128  }
  0x17   : > { %s900_s28 = smov 8   ;;  %p178_p12 = scmp.lt.s32.totalorder %s897_s19, 5 }
  0x18   : > { %733 = dma.hbm_to_vmem [thread:$0]  (!%p731_p10), %s169_s24, 2048, %s171_s9, %s156_s27, %s899_s23, %s899_s23, %s900_s28  }
  0x19   : > { %p179_p13 = pnand %p653_p11, %p178_p12 }
  0x1a   : > { %s184_s30 = sand.u32 (!%p179_p13), 1, %s873_s13  }
  0x1b   : > { %182 = sbr.rel (%p179_p13) target bundleno = 258 (0x102), region = 28  ;;  %s654_s4 = sshll.u32 (!%p179_p13), %s184_s30, 7 }
  0x1c   : > { %s185_s6 = scalar_lea.sflag (!%p179_p13), [#allocation3], %s184_s30  ;;  %s1001_s7 = scalar_lea.vmem (!%p179_p13), [#allocation2], %s654_s4 }
  0x20   : > { %864 = dma.done.wait (%p978_p7), %s185_s6, 2048  }
  0x21   : > { %866 = vsyncadd (%p978_p7), %s185_s6, 4294965248  ;;  %v703_v0 = vld [vmem:[%s1183_s1 + $0x38] sm:$0xff]  ;;  %v702_v1 = vld [vmem:[%s1183_s1 + $0x30] sm:$0xff]  ;;  %s655_s25 = sshll.u32 %s881_s15, 3  ;;  %p227_p0 = scmp.lt.s32.totalorder %s885_s16, 1  ;;  %vm382_vm0 = vcmask 261120  }
  0x22   : > { %333 = vmatpush.bf16.msra.mxu0 %v703_v0  ;;  %704 = vmatpush.bf16.msra.mxu1 %v703_v0  ;;  %v701_v2 = vld [vmem:[%s1183_s1 + $0x28] sm:$0xff]  ;;  %v700_v3 = vld [vmem:[%s1183_s1 + $0x20] sm:$0xff]  ;;  %v699_v4 = vld [vmem:[%s1183_s1 + $0x18] sm:$0xff]  ;;  %p229_p1 = scmp.lt.s32.totalorder %s655_s25, 15  ;;  %p239_p2 = scmp.lt.s32.totalorder %s881_s15, 1  ;;  %vm489_vm1 = vcmask 1040384  }
  0x23   : > { %705 = vmatpush.bf16.msra.mxu2 %v703_v0  ;;  %706 = vmatpush.bf16.msra.mxu3 %v703_v0  ;;  %v698_v5 = vld [vmem:[%s1183_s1 + $0x10] sm:$0xff]  ;;  %v697_v6 = vld [vmem:[%s1183_s1 + $0x8] sm:$0xff]  ;;  %v696_v7 = vld [vmem:[%s1183_s1] sm:$0xff]  ;;  %s1202_s16 = smov (!%p227_p0, %s885_s16), 1  ;;  %vm491_vm2 = vcmask 254976  }
  0x24   : > { %v245_v8 = vld [vmem:[%s1001_s7] sm:$0xff]  ;;  %v246_v9 = vld [vmem:[%s1001_s7 + $0x8] sm:$0xff]  ;;  %v247_v20 = vld [vmem:[%s1001_s7 + $0x10] sm:$0xff]  ;;  %s1204_s25 = smov (!%p229_p1, %s655_s25), 15  ;;  %s657_s8 = sshll.u32 %s1202_s16, 5 }
  0x25   : > { %v249_v10 = vld [vmem:[%s1001_s7 + $0x20] sm:$0xff]  ;;  %v250_v11 = vld [vmem:[%s1001_s7 + $0x28] sm:$0xff]  ;;  %v261_v16 = vpack.c.bf16 %v246_v9, %v245_v8  ;;  %v248_v21 = vld [vmem:[%s1001_s7 + $0x18] sm:$0xff]  ;;  %s656_s29 = sshll.u32 %s1204_s25, 1  ;;  %s1206_s15 = smov (!%p239_p2, %s881_s15), 1 }
  0x26   : > { %334 = vmatpush.bf16.msra.mxu0 %v702_v1  ;;  %707 = vmatpush.bf16.msra.mxu1 %v702_v1  ;;  %v253_v12 = vld [vmem:[%s1001_s7 + $0x40] sm:$0xff]  ;;  %v254_v13 = vld [vmem:[%s1001_s7 + $0x48] sm:$0xff]  ;;  %v263_v17 = vpack.c.bf16 %v250_v11, %v249_v10  ;;  %v251_v22 = vld [vmem:[%s1001_s7 + $0x30] sm:$0xff]  ;;  %v262_v28 = vpack.c.bf16 %v248_v21, %v247_v20  ;;  %s233_s9 = sadd.s32 %s657_s8, %s656_s29  ;;  %s659_s12 = sshll.u32 %s1202_s16, 1 }
  0x27   : > { %708 = vmatpush.bf16.msra.mxu2 %v702_v1  ;;  %709 = vmatpush.bf16.msra.mxu3 %v702_v1  ;;  %v257_v14 = vld [vmem:[%s1001_s7 + $0x60] sm:$0xff]  ;;  %v258_v15 = vld [vmem:[%s1001_s7 + $0x68] sm:$0xff]  ;;  %v265_v18 = vpack.c.bf16 %v254_v13, %v253_v12  ;;  %v252_v23 = vld [vmem:[%s1001_s7 + $0x38] sm:$0xff]  ;;  %s658_s10 = sshll.u32 %s233_s9, 3  ;;  %s242_s20 = sadd.s32 %s659_s12, %s1206_s15 }
  0x28   : > { %v267_v19 = vpack.c.bf16 %v258_v15, %v257_v14  ;;  %v255_v24 = vld [vmem:[%s1001_s7 + $0x50] sm:$0xff]  ;;  %v256_v25 = vld [vmem:[%s1001_s7 + $0x58] sm:$0xff]  ;;  %v264_v29 = vpack.c.bf16 %v252_v23, %v251_v22  ;;  %s1056_s26 = scalar_lea.vmem %s1184_s2, %s658_s10  ;;  %s660_s24 = sshll.u32 %s242_s20, 1 }
  0x29   : > { %v259_v26 = vld [vmem:[%s1001_s7 + $0x70] sm:$0xff]  ;;  %v260_v27 = vld [vmem:[%s1001_s7 + $0x78] sm:$0xff]  ;;  %v266_v30 = vpack.c.bf16 %v256_v25, %v255_v24  ;;  %s244_s28 = scalar_lea.vmem %s1185_s3, %s660_s24 }
  0x2a   : > { %335 = vmatpush.bf16.msra.mxu0 %v701_v2  ;;  %710 = vmatpush.bf16.msra.mxu1 %v701_v2  ;;  %v268_v31 = vpack.c.bf16 %v260_v27, %v259_v26 }
  0x2b   : > { %711 = vmatpush.bf16.msra.mxu2 %v701_v2  ;;  %712 = vmatpush.bf16.msra.mxu3 %v701_v2 }
  0x2e   : > { %336 = vmatpush.bf16.msra.mxu0 %v700_v3  ;;  %713 = vmatpush.bf16.msra.mxu1 %v700_v3 }
  0x2f   : > { %714 = vmatpush.bf16.msra.mxu2 %v700_v3  ;;  %715 = vmatpush.bf16.msra.mxu3 %v700_v3 }
  0x32   : > { %337 = vmatpush.bf16.msra.mxu0 %v699_v4  ;;  %716 = vmatpush.bf16.msra.mxu1 %v699_v4 }
  0x33   : > { %717 = vmatpush.bf16.msra.mxu2 %v699_v4  ;;  %718 = vmatpush.bf16.msra.mxu3 %v699_v4 }
  0x36   : > { %338 = vmatpush.bf16.msra.mxu0 %v698_v5  ;;  %719 = vmatpush.bf16.msra.mxu1 %v698_v5 }
  0x37   : > { %720 = vmatpush.bf16.msra.mxu2 %v698_v5  ;;  %721 = vmatpush.bf16.msra.mxu3 %v698_v5 }
  0x3a   : > { %339 = vmatpush.bf16.msra.mxu0 %v697_v6  ;;  %722 = vmatpush.bf16.msra.mxu1 %v697_v6 }
  0x3b   : > { %723 = vmatpush.bf16.msra.mxu2 %v697_v6  ;;  %724 = vmatpush.bf16.msra.mxu3 %v697_v6 }
  0x3e   : > { %340 = vmatpush.bf16.msra.mxu0 %v696_v7  ;;  %725 = vmatpush.bf16.msra.mxu1 %v696_v7 }
  0x3f   : > { %726 = vmatpush.bf16.msra.mxu2 %v696_v7  ;;  %727 = vmatpush.bf16.msra.mxu3 %v696_v7 }
  0x41   : > { %341 = vmatmul.bf16.vlgmr.msra.gmra.mxu0 %v261_v16  ;;  %351 = vmatmul.bf16.vlgmr.msra.gmra.mxu1 %v263_v17 }
  0x42   : > { %361 = vmatmul.bf16.vlgmr.msra.gmra.mxu2 %v265_v18  ;;  %371 = vmatmul.bf16.vlgmr.msra.gmra.mxu3 %v267_v19 }
  0x51   : > { %346 = vmatmul.bf16.gmra.mxu0 %v262_v28  ;;  %356 = vmatmul.bf16.gmra.mxu1 %v264_v29 }
  0x52   : > { %366 = vmatmul.bf16.gmra.mxu2 %v266_v30  ;;  %376 = vmatmul.bf16.gmra.mxu3 %v268_v31 }
  0xbe   : > { %v342_v32 = vpop.f32.mrf.mxu0  ;;  %v352_v33 = vpop.f32.mrf.mxu1 }
  0xbf   : > { %383 = vst.msk [vmem:[%s1056_s26] sm:$0xff] %vm382_vm0, %v342_v32  ;;  %v436_v43 = vmul.f32 %v342_v32, %v342_v32  ;;  %v399_v46 = vsel %vm382_vm0, %v342_v32, 0.0  ;;  %v440_v58 = vmul.f32 %v352_v33, %v352_v33  ;;  %v406_v63 = vsel %vm382_vm0, %v352_v33, 0.0 }
  0xc0   : > { %387 = vst.msk [vmem:[%s1056_s26 + $0x20] sm:$0xff] %vm382_vm0, %v352_v33 }
  0xc1   : > { %v452_v50 = vsel %vm382_vm0, %v436_v43, 0.0  ;;  %v459_v4 = vsel %vm382_vm0, %v440_v58, 0.0 }
  0xc5   : > { %v1062_v34 = vpop.f32.mrf.mxu2  ;;  %v1064_v35 = vpop.f32.mrf.mxu3 }
  0xc6   : > { %v344_v36 = vpop.f32.mrf.mxu0  ;;  %v354_v37 = vpop.f32.mrf.mxu1  ;;  %391 = vst.msk [vmem:[%s1056_s26 + $0x40] sm:$0xff] %vm382_vm0, %v1062_v34  ;;  %v444_v16 = vmul.f32 %v1062_v34, %v1062_v34  ;;  %v414_v21 = vsel %vm382_vm0, %v1062_v34, 0.0 }
  0xc7   : > { %384 = vst.msk [vmem:[%s1056_s26 + $0x8] sm:$0xff] %vm382_vm0, %v344_v36  ;;  %v437_v42 = vmul.f32 %v344_v36, %v344_v36  ;;  %v400_v44 = vsel %vm382_vm0, %v344_v36, 0.0  ;;  %v441_v0 = vmul.f32 %v354_v37, %v354_v37  ;;  %v408_v5 = vsel %vm382_vm0, %v354_v37, 0.0 }
  0xc8   : > { %388 = vst.msk [vmem:[%s1056_s26 + $0x28] sm:$0xff] %vm382_vm0, %v354_v37  ;;  %v401_v49 = vadd.f32 %v400_v44, %v399_v46  ;;  %v467_v26 = vsel %vm382_vm0, %v444_v16, 0.0  ;;  %v448_v37 = vmul.f32 %v1064_v35, %v1064_v35 }
  0xc9   : > { %395 = vst.msk [vmem:[%s1056_s26 + $0x60] sm:$0xff] %vm382_vm0, %v1064_v35  ;;  %v453_v47 = vsel %vm382_vm0, %v437_v42, 0.0  ;;  %v461_v9 = vsel %vm382_vm0, %v441_v0, 0.0 }
  0xca   : > { %v454_v54 = vadd.f32 %v453_v47, %v452_v50 }
  0xcd   : > { %v1076_v38 = vpop.f32.mrf.mxu2  ;;  %v1078_v39 = vpop.f32.mrf.mxu3 }
  0xce   : > { %v347_v40 = vpop.f32.mrf.mxu0  ;;  %v357_v41 = vpop.f32.mrf.mxu1  ;;  %392 = vst.msk [vmem:[%s1056_s26 + $0x48] sm:$0xff] %vm382_vm0, %v1076_v38  ;;  %v445_v22 = vmul.f32 %v1076_v38, %v1076_v38  ;;  %v416_v27 = vsel %vm382_vm0, %v1076_v38, 0.0  ;;  %v422_v38 = vsel %vm382_vm0, %v1064_v35, 0.0  ;;  %v449_v44 = vmul.f32 %v1078_v39, %v1078_v39 }
  0xcf   : > { %385 = vst.msk [vmem:[%s1056_s26 + $0x10] sm:$0xff] %vm382_vm0, %v347_v40  ;;  %v438_v45 = vmul.f32 %v347_v40, %v347_v40  ;;  %v402_v48 = vsel %vm382_vm0, %v347_v40, 0.0  ;;  %v442_v6 = vmul.f32 %v357_v41, %v357_v41  ;;  %v410_v10 = vsel %vm382_vm0, %v357_v41, 0.0 }
  0xd0   : > { %389 = vst.msk [vmem:[%s1056_s26 + $0x30] sm:$0xff] %vm382_vm0, %v357_v41  ;;  %v403_v55 = vadd.f32 %v402_v48, %v401_v49  ;;  %v469_v31 = vsel %vm382_vm0, %v445_v22, 0.0  ;;  %v475_v48 = vsel %vm382_vm0, %v448_v37, 0.0  ;;  %v424_v49 = vsel %vm382_vm0, %v1078_v39, 0.0 }
  0xd1   : > { %396 = vst.msk [vmem:[%s1056_s26 + $0x68] sm:$0xff] %vm382_vm0, %v1078_v39  ;;  %v455_v51 = vsel %vm382_vm0, %v438_v45, 0.0  ;;  %v463_v17 = vsel %vm382_vm0, %v442_v6, 0.0  ;;  %v477_v35 = vsel %vm382_vm0, %v449_v44, 0.0 }
  0xd2   : > { %v456_v61 = vadd.f32 %v455_v51, %v454_v54 }
  0xd5   : > { %v367_v52 = vpop.f32.mrf.mxu2  ;;  %v1096_v53 = vpop.f32.mrf.mxu3 }
  0xd6   : > { %v349_v56 = vpop.f32.mrf.mxu0  ;;  %v359_v57 = vpop.f32.mrf.mxu1  ;;  %393 = vst.msk [vmem:[%s1056_s26 + $0x50] sm:$0xff] %vm382_vm0, %v367_v52  ;;  %v446_v28 = vmul.f32 %v367_v52, %v367_v52  ;;  %v418_v32 = vsel %vm382_vm0, %v367_v52, 0.0  ;;  %v450_v50 = vmul.f32 %v1096_v53, %v1096_v53  ;;  %v426_v54 = vsel %vm382_vm0, %v1096_v53, 0.0 }
  0xd7   : > { %386 = vst.msk [vmem:[%s1056_s26 + $0x18] sm:$0xff] %vm382_vm0, %v349_v56  ;;  %v404_v59 = vsel %vm382_vm0, %v349_v56, 0.0  ;;  %v439_v60 = vmul.f32 %v349_v56, %v349_v56  ;;  %v443_v11 = vmul.f32 %v359_v57, %v359_v57  ;;  %v412_v18 = vsel %vm382_vm0, %v359_v57, 0.0 }
  0xd8   : > { %v405_v62 = vadd.f32 %v404_v59, %v403_v55  ;;  %390 = vst.msk [vmem:[%s1056_s26 + $0x38] sm:$0xff] %vm382_vm0, %v359_v57  ;;  %v471_v40 = vsel %vm382_vm0, %v446_v28, 0.0  ;;  %v479_v58 = vsel %vm382_vm0, %v450_v50, 0.0 }
  0xd9   : > { %v457_v1 = vsel %vm382_vm0, %v439_v60, 0.0  ;;  %397 = vst.msk [vmem:[%s1056_s26 + $0x70] sm:$0xff] %vm382_vm0, %v1096_v53  ;;  %v465_v23 = vsel %vm382_vm0, %v443_v11, 0.0 }
  0xda   : > { %v407_v2 = vadd.f32 %v406_v63, %v405_v62  ;;  %v458_v3 = vadd.f32 %v457_v1, %v456_v61 }
  0xdc   : > { %v460_v7 = vadd.f32 %v459_v4, %v458_v3  ;;  %v409_v8 = vadd.f32 %v408_v5, %v407_v2 }
  0xdd   : > { %v369_v12 = vpop.f32.mrf.mxu2  ;;  %v379_v13 = vpop.f32.mrf.mxu3 }
  0xde   : > { %v411_v14 = vadd.f32 %v410_v10, %v409_v8  ;;  %v462_v15 = vadd.f32 %v461_v9, %v460_v7  ;;  %394 = vst.msk [vmem:[%s1056_s26 + $0x58] sm:$0xff] %vm382_vm0, %v369_v12  ;;  %v447_v33 = vmul.f32 %v369_v12, %v369_v12  ;;  %v420_v41 = vsel %vm382_vm0, %v369_v12, 0.0 }
  0xdf   : > { %398 = vst.msk [vmem:[%s1056_s26 + $0x78] sm:$0xff] %vm382_vm0, %v379_v13  ;;  %v451_v55 = vmul.f32 %v379_v13, %v379_v13  ;;  %v428_v59 = vsel %vm382_vm0, %v379_v13, 0.0 }
  0xe0   : > { %v413_v19 = vadd.f32 %v412_v18, %v411_v14  ;;  %v464_v20 = vadd.f32 %v463_v17, %v462_v15  ;;  %v473_v45 = vsel %vm382_vm0, %v447_v33, 0.0 }
  0xe1   : > { %v481_v61 = vsel %vm382_vm0, %v451_v55, 0.0 }
  0xe2   : > { %v415_v24 = vadd.f32 %v414_v21, %v413_v19  ;;  %v466_v25 = vadd.f32 %v465_v23, %v464_v20 }
  0xe4   : > { %v468_v29 = vadd.f32 %v467_v26, %v466_v25  ;;  %v417_v30 = vadd.f32 %v416_v27, %v415_v24 }
  0xe6   : > { %v419_v34 = vadd.f32 %v418_v32, %v417_v30  ;;  %v470_v36 = vadd.f32 %v469_v31, %v468_v29 }
  0xe8   : > { %v472_v42 = vadd.f32 %v471_v40, %v470_v36  ;;  %v421_v43 = vadd.f32 %v420_v41, %v419_v34 }
  0xea   : > { %v423_v46 = vadd.f32 %v422_v38, %v421_v43  ;;  %v474_v47 = vadd.f32 %v473_v45, %v472_v42 }
  0xec   : > { %v476_v51 = vadd.f32 %v475_v48, %v474_v47  ;;  %v425_v52 = vadd.f32 %v424_v49, %v423_v46 }
  0xee   : > { %v427_v56 = vadd.f32 %v426_v54, %v425_v52  ;;  %v478_v57 = vadd.f32 %v477_v35, %v476_v51 }
  0xf0   : > { %v480_v39 = vadd.f32 %v479_v58, %v478_v57  ;;  %v429_v60 = vadd.f32 %v428_v59, %v427_v56 }
  0xf2   : > { %v430_v62 = vrot.slane %v429_v60, 4  ;;  %v482_v63 = vadd.f32 %v481_v61, %v480_v39 }
  0xf4   : > { %v431_v0 = vadd.f32 %v430_v62, %v429_v60  ;;  %v483_v1 = vrot.slane %v482_v63, 4 }
  0xf6   : > { %v432_v2 = vrot.slane %v431_v0, 2  ;;  %v484_v53 = vadd.f32 %v483_v1, %v482_v63 }
  0xf8   : > { %v433_v3 = vadd.f32 %v432_v2, %v431_v0  ;;  %v485_v4 = vrot.slane %v484_v53, 2 }
  0xfa   : > { %v434_v5 = vrot.slane %v433_v3, 1  ;;  %v486_v6 = vadd.f32 %v485_v4, %v484_v53 }
  0xfc   : > { %v487_v7 = vrot.slane %v486_v6, 1  ;;  %v435_v8 = vadd.f32 %v434_v5, %v433_v3 }
  0xfe   : > { %v488_v9 = vadd.f32 %v487_v7, %v486_v6 }
 0x100   : > { %v490_v10 = vsel %vm489_vm1, %v435_v8, %v488_v9 }
 0x101   : > { %492 = vst.msk [vmem:[%s244_s28] sm:$0x3] %vm491_vm2, %v490_v10 }
 0x102 PF: > { %s17_s19 = sadd.s32 1, %s897_s19   ;;  %s1188_s12 = smov %s873_s13 }
 0x103   : > { %p14_p3 = scmp.ge.s32.totalorder %s17_s19, 6   ;;  %s1189_s13 = smov %s877_s14 }
 0x104   : > { %s1190_s14 = smov %s988_s5  ;;  %s1191_s15 = smov %s889_s17 }
 0x105   : > { %s1192_s16 = smov %s893_s18  ;;  %s1193_s17 = smov %s1196_s21 }
 0x106   : > { %s1194_s18 = smov %s1200_s22  ;;  %16 = sbr.rel (!%p14_p3) target bundleno = 5 (0x5), region = 80 }
 0x10b   :  { %547 = vsyncpa [#allocation3], 1 }
 0x10c   :  { %549 = vsyncpa [#allocation3 + $0x1], 1 }

// kernel: _lambda_.6
= control target key start
LH: loop header
LB: loop body
LE: loop exit
PB: predicated region body
PF: predicated region fallthrough
CT: control target
= control target key end

     0   :  { %s702_s15 = smov 0   ;;  %s704_s16 = smov 0   ;;  %s818_s0 = inlined_call_operand.vmem [shape: f32[2,16,16,32], index: 0, kind: input, shape index: {}]   ;;  %s819_s1 = inlined_call_operand.vmem [shape: f32[1,32], index: 1, kind: input, shape index: {}]   ;;  %s820_s2 = inlined_call_operand.vmem [shape: f32[1,32], index: 2, kind: input, shape index: {}]   ;;  %s821_s3 = inlined_call_operand.vmem [shape: bf16[32,128], index: 3, kind: input, shape index: {}]   ;;  %s822_s4 = inlined_call_operand.vmem [shape: f32[2,2,2,128], index: 4, kind: output, shape index: {}]  }
   0x1   :  { %s706_s17 = smov 0   ;;  %s708_s18 = smov 0  }
   0x2   :  { %s710_s19 = smov 0  }
   0x3 LB: > { %s23_s20 = sadd.s32 1, %s667_s17  ;;  %s26_s21 = sadd.s32 1, %s671_s18  ;;  %s675_s19 = sphi %s710_s19, %s14_s19   ;;  %s671_s18 = sphi %s708_s18, %s826_s18   ;;  %s667_s17 = sphi %s706_s17, %s825_s17   ;;  %s663_s16 = sphi %s704_s16, %s824_s16   ;;  %s659_s15 = sphi %s702_s15, %s823_s15  }
   0x4   : > { %p24_p0 = scmp.ge.s32.totalorder %s23_s20, 2  ;;  %p562_p1 = scmp.ge.s32.totalorder %s675_s19, 1 }
   0x5   : > { %p184_p2 = scmp.lt.s32.totalorder %s675_s19, 5 }
   0x6   : > { %s828_s20 = smov (%p24_p0, %s23_s20), 0  ;;  %s830_s21 = smov (!%p24_p0, %s26_s21), %s671_s18 }
   0x7   : > { %p185_p3 = pnand %p562_p1, %p184_p2  ;;  %p28_p4 = scmp.ge.s32.totalorder %s830_s21, 2 }
   0x8   : > { %s563_s24 = sshll.u32 (!%p185_p3), %s659_s15, 3  ;;  %p219_p5 = scmp.lt.s32.totalorder (!%p185_p3), %s663_s16, 1 }
   0x9   : > { %s832_s21 = smov (%p28_p4, %s830_s21), 0  ;;  %188 = sbr.rel (%p185_p3) target bundleno = 220 (0xdc), region = 36 }
   0xa   : > { %p221_p6 = scmp.lt.s32.totalorder (!%p185_p3), %s563_s24, 15  ;;  %p231_p7 = scmp.lt.s32.totalorder (!%p185_p3), %s659_s15, 1 }
   0xe   : > { %v588_v0 = vld [vmem:[%s821_s3 + $0x8] sm:$0xff]  ;;  %v587_v1 = vld [vmem:[%s821_s3] sm:$0xff]  ;;  %s834_s16 = smov (!%p219_p5, %s663_s16), 1  ;;  %s836_s24 = smov (!%p221_p6, %s563_s24), 15  ;;  %vm334_vm0 = vcmask 261120   ;;  %vm466_vm1 = vcmask 1040384  }
   0xf   : > { %365 = vmatpush.bf16.msra.mxu0 %v588_v0  ;;  %589 = vmatpush.bf16.msra.mxu1 %v588_v0  ;;  %s565_s27 = sshll.u32 %s834_s16, 5  ;;  %s564_s28 = sshll.u32 %s836_s24, 1  ;;  %v635_v2 = vld [vmem:[%s819_s1] ss:$0 sm:$0xff] }
  0x10   : > { %590 = vmatpush.bf16.msra.mxu2 %v588_v0  ;;  %591 = vmatpush.bf16.msra.mxu3 %v588_v0  ;;  %s225_s29 = sadd.s32 %s565_s27, %s564_s28  ;;  %v755_v3 = vld [vmem:[%s820_s2] ss:$0 sm:$0xff]  ;;  %s838_s15 = smov (!%p231_p7, %s659_s15), 1 }
  0x11   : > { %s566_s6 = sshll.u32 %s225_s29, 3  ;;  %s567_s12 = sshll.u32 %s834_s16, 1 }
  0x12   : > { %s750_s9 = scalar_lea.vmem %s818_s0, %s566_s6  ;;  %s234_s13 = sadd.s32 %s567_s12, %s838_s15 }
  0x13   : > { %366 = vmatpush.bf16.msra.mxu0 %v587_v1  ;;  %592 = vmatpush.bf16.msra.mxu1 %v587_v1  ;;  %v238_v4 = vld [vmem:[%s750_s9] sm:$0xff]  ;;  %v239_v5 = vld [vmem:[%s750_s9 + $0x8] sm:$0xff]  ;;  %v240_v30 = vld [vmem:[%s750_s9 + $0x10] sm:$0xff]  ;;  %s568_s14 = sshll.u32 %s234_s13, 1 }
  0x14   : > { %593 = vmatpush.bf16.msra.mxu2 %v587_v1  ;;  %594 = vmatpush.bf16.msra.mxu3 %v587_v1  ;;  %v242_v6 = vld [vmem:[%s750_s9 + $0x20] sm:$0xff]  ;;  %v258_v7 = vmul.f32 %v635_v2, %v238_v4  ;;  %v259_v8 = vmul.f32 %v635_v2, %v239_v5  ;;  %v243_v9 = vld [vmem:[%s750_s9 + $0x28] sm:$0xff]  ;;  %v241_v35 = vld [vmem:[%s750_s9 + $0x18] sm:$0xff]  ;;  %v260_v45 = vmul.f32 %v635_v2, %v240_v30  ;;  %s236_s24 = scalar_lea.vmem %s822_s4, %s568_s14 }
  0x15   : > { %v262_v10 = vmul.f32 %v635_v2, %v242_v6  ;;  %v246_v11 = vld [vmem:[%s750_s9 + $0x40] sm:$0xff]  ;;  %v247_v12 = vld [vmem:[%s750_s9 + $0x48] sm:$0xff]  ;;  %v263_v13 = vmul.f32 %v635_v2, %v243_v9  ;;  %v244_v36 = vld [vmem:[%s750_s9 + $0x30] sm:$0xff]  ;;  %v261_v46 = vmul.f32 %v635_v2, %v241_v35 }
  0x16   : > { %v266_v14 = vmul.f32 %v635_v2, %v246_v11  ;;  %v267_v15 = vmul.f32 %v635_v2, %v247_v12  ;;  %v250_v16 = vld [vmem:[%s750_s9 + $0x60] sm:$0xff]  ;;  %v251_v17 = vld [vmem:[%s750_s9 + $0x68] sm:$0xff]  ;;  %v278_v18 = vadd.f32 %v755_v3, %v258_v7  ;;  %v279_v19 = vadd.f32 %v755_v3, %v259_v8  ;;  %v245_v37 = vld [vmem:[%s750_s9 + $0x38] sm:$0xff] }
  0x17   : > { %v282_v20 = vadd.f32 %v755_v3, %v262_v10  ;;  %v270_v21 = vmul.f32 %v635_v2, %v250_v16  ;;  %v283_v22 = vadd.f32 %v755_v3, %v263_v13  ;;  %v271_v25 = vmul.f32 %v635_v2, %v251_v17  ;;  %v248_v40 = vld [vmem:[%s750_s9 + $0x50] sm:$0xff]  ;;  %v249_v41 = vld [vmem:[%s750_s9 + $0x58] sm:$0xff] }
  0x18   : > { %v286_v23 = vadd.f32 %v755_v3, %v266_v14  ;;  %v287_v24 = vadd.f32 %v755_v3, %v267_v15  ;;  %v294_v26 = vmax.f32 %v278_v18, 0.0  ;;  %v295_v27 = vmax.f32 %v279_v19, 0.0  ;;  %v252_v49 = vld [vmem:[%s750_s9 + $0x70] sm:$0xff]  ;;  %v253_v50 = vld [vmem:[%s750_s9 + $0x78] sm:$0xff] }
  0x19   : > { %v298_v28 = vmax.f32 %v282_v20, 0.0  ;;  %v290_v29 = vadd.f32 %v755_v3, %v270_v21  ;;  %v299_v31 = vmax.f32 %v283_v22, 0.0  ;;  %v291_v34 = vadd.f32 %v755_v3, %v271_v25 }
  0x1a   : > { %v302_v32 = vmax.f32 %v286_v23, 0.0  ;;  %v303_v33 = vmax.f32 %v287_v24, 0.0  ;;  %v310_v38 = vpack.c.bf16 %v295_v27, %v294_v26  ;;  %v264_v47 = vmul.f32 %v635_v2, %v244_v36 }
  0x1b   : > { %v306_v39 = vmax.f32 %v290_v29, 0.0  ;;  %v312_v42 = vpack.c.bf16 %v299_v31, %v298_v28  ;;  %v307_v44 = vmax.f32 %v291_v34, 0.0  ;;  %v265_v48 = vmul.f32 %v635_v2, %v245_v37 }
  0x1c   : > { %v314_v43 = vpack.c.bf16 %v303_v33, %v302_v32  ;;  %577 = vmatmul.msk.bf16.vlgmr.msra.gmra.mxu0 %vm334_vm0, %v310_v38  ;;  %v268_v52 = vmul.f32 %v635_v2, %v248_v40  ;;  %v269_v53 = vmul.f32 %v635_v2, %v249_v41  ;;  %v272_v54 = vmul.f32 %v635_v2, %v252_v49 }
  0x1d   : > { %579 = vmatmul.msk.bf16.vlgmr.msra.gmra.mxu1 %vm334_vm0, %v312_v42  ;;  %v316_v51 = vpack.c.bf16 %v307_v44, %v306_v39  ;;  %v273_v55 = vmul.f32 %v635_v2, %v253_v50  ;;  %v280_v56 = vadd.f32 %v755_v3, %v260_v45  ;;  %v281_v57 = vadd.f32 %v755_v3, %v261_v46 }
  0x1e   : > { %581 = vmatmul.msk.bf16.vlgmr.msra.gmra.mxu2 %vm334_vm0, %v314_v43  ;;  %v284_v58 = vadd.f32 %v755_v3, %v264_v47  ;;  %v285_v59 = vadd.f32 %v755_v3, %v265_v48  ;;  %v288_v60 = vadd.f32 %v755_v3, %v268_v52  ;;  %v289_v61 = vadd.f32 %v755_v3, %v269_v53 }
  0x1f   : > { %583 = vmatmul.msk.bf16.vlgmr.msra.gmra.mxu3 %vm334_vm0, %v316_v51  ;;  %v292_v62 = vadd.f32 %v755_v3, %v272_v54  ;;  %v293_v63 = vadd.f32 %v755_v3, %v273_v55  ;;  %v296_v0 = vmax.f32 %v280_v56, 0.0  ;;  %v297_v1 = vmax.f32 %v281_v57, 0.0 }
  0x20   : > { %v300_v4 = vmax.f32 %v284_v58, 0.0  ;;  %v301_v2 = vmax.f32 %v285_v59, 0.0  ;;  %v304_v5 = vmax.f32 %v288_v60, 0.0  ;;  %v305_v6 = vmax.f32 %v289_v61, 0.0 }
  0x21   : > { %v308_v7 = vmax.f32 %v292_v62, 0.0  ;;  %v309_v8 = vmax.f32 %v293_v63, 0.0  ;;  %v311_v9 = vpack.c.bf16 %v297_v1, %v296_v0 }
  0x22   : > { %v313_v10 = vpack.c.bf16 %v301_v2, %v300_v4  ;;  %v315_v11 = vpack.c.bf16 %v305_v6, %v304_v5 }
  0x23   : > { %v317_v12 = vpack.c.bf16 %v309_v8, %v308_v7 }
  0x2c   : > { %578 = vmatmul.msk.bf16.gmra.mxu0 %vm334_vm0, %v311_v9 }
  0x2d   : > { %580 = vmatmul.msk.bf16.gmra.mxu1 %vm334_vm0, %v313_v10 }
  0x2e   : > { %582 = vmatmul.msk.bf16.gmra.mxu2 %vm334_vm0, %v315_v11 }
  0x2f   : > { %584 = vmatmul.msk.bf16.gmra.mxu3 %vm334_vm0, %v317_v12 }
  0x99   : > { %v368_v3 = vpop.f32.mrf.mxu0 }
  0x9a   : > { %v378_v13 = vpop.f32.mrf.mxu1  ;;  %v429_v22 = vmul.f32 %v368_v3, %v368_v3 }
  0x9b   : > { %v433_v32 = vmul.f32 %v378_v13, %v378_v13 }
  0xa1   : > { %v370_v14 = vpop.f32.mrf.mxu0  ;;  %v388_v15 = vpop.f32.mrf.mxu2 }
  0xa2   : > { %v380_v16 = vpop.f32.mrf.mxu1  ;;  %v398_v18 = vpop.f32.mrf.mxu3  ;;  %v430_v20 = vmul.f32 %v370_v14, %v370_v14  ;;  %v408_v23 = vadd.f32 %v370_v14, %v368_v3  ;;  %v437_v46 = vmul.f32 %v388_v15, %v388_v15 }
  0xa3   : > { %v434_v36 = vmul.f32 %v380_v16, %v380_v16  ;;  %v441_v60 = vmul.f32 %v398_v18, %v398_v18 }
  0xa4   : > { %v445_v25 = vadd.f32 %v430_v20, %v429_v22 }
  0xa9   : > { %v373_v17 = vpop.f32.mrf.mxu0  ;;  %v390_v19 = vpop.f32.mrf.mxu2 }
  0xaa   : > { %v383_v21 = vpop.f32.mrf.mxu1  ;;  %v431_v24 = vmul.f32 %v373_v17, %v373_v17  ;;  %v409_v26 = vadd.f32 %v408_v23, %v373_v17  ;;  %v400_v31 = vpop.f32.mrf.mxu3  ;;  %v438_v50 = vmul.f32 %v390_v19, %v390_v19 }
  0xab   : > { %v435_v40 = vmul.f32 %v383_v21, %v383_v21  ;;  %v442_v63 = vmul.f32 %v400_v31, %v400_v31 }
  0xac   : > { %v446_v28 = vadd.f32 %v445_v25, %v431_v24 }
  0xb1   : > { %v375_v27 = vpop.f32.mrf.mxu0  ;;  %v393_v35 = vpop.f32.mrf.mxu2 }
  0xb2   : > { %v410_v29 = vadd.f32 %v409_v26, %v375_v27  ;;  %v432_v30 = vmul.f32 %v375_v27, %v375_v27  ;;  %v385_v39 = vpop.f32.mrf.mxu1  ;;  %v403_v49 = vpop.f32.mrf.mxu3  ;;  %v439_v55 = vmul.f32 %v393_v35, %v393_v35 }
  0xb3   : > { %v436_v44 = vmul.f32 %v385_v39, %v385_v39  ;;  %v443_v5 = vmul.f32 %v403_v49, %v403_v49 }
  0xb4   : > { %v411_v33 = vadd.f32 %v410_v29, %v378_v13  ;;  %v447_v34 = vadd.f32 %v446_v28, %v432_v30 }
  0xb6   : > { %v448_v37 = vadd.f32 %v447_v34, %v433_v32  ;;  %v412_v38 = vadd.f32 %v411_v33, %v380_v16 }
  0xb8   : > { %v413_v41 = vadd.f32 %v412_v38, %v383_v21  ;;  %v449_v42 = vadd.f32 %v448_v37, %v434_v36 }
  0xb9   : > { %v395_v53 = vpop.f32.mrf.mxu2 }
  0xba   : > { %v414_v43 = vadd.f32 %v413_v41, %v385_v39  ;;  %v450_v45 = vadd.f32 %v449_v42, %v435_v40  ;;  %v440_v59 = vmul.f32 %v395_v53, %v395_v53  ;;  %v405_v4 = vpop.f32.mrf.mxu3 }
  0xbb   : > { %v444_v9 = vmul.f32 %v405_v4, %v405_v4 }
  0xbc   : > { %v415_v47 = vadd.f32 %v414_v43, %v388_v15  ;;  %v451_v48 = vadd.f32 %v450_v45, %v436_v44 }
  0xbe   : > { %v452_v51 = vadd.f32 %v451_v48, %v437_v46  ;;  %v416_v52 = vadd.f32 %v415_v47, %v390_v19 }
  0xc0   : > { %v417_v54 = vadd.f32 %v416_v52, %v393_v35  ;;  %v453_v56 = vadd.f32 %v452_v51, %v438_v50 }
  0xc2   : > { %v454_v57 = vadd.f32 %v453_v56, %v439_v55  ;;  %v418_v58 = vadd.f32 %v417_v54, %v395_v53 }
  0xc4   : > { %v419_v61 = vadd.f32 %v418_v58, %v398_v18  ;;  %v455_v62 = vadd.f32 %v454_v57, %v440_v59 }
  0xc6   : > { %v456_v0 = vadd.f32 %v455_v62, %v441_v60  ;;  %v420_v1 = vadd.f32 %v419_v61, %v400_v31 }
  0xc8   : > { %v421_v2 = vadd.f32 %v420_v1, %v403_v49  ;;  %v457_v6 = vadd.f32 %v456_v0, %v442_v63 }
  0xca   : > { %v458_v7 = vadd.f32 %v457_v6, %v443_v5  ;;  %v422_v8 = vadd.f32 %v421_v2, %v405_v4 }
  0xcc   : > { %v423_v10 = vrot.slane %v422_v8, 4  ;;  %v459_v11 = vadd.f32 %v458_v7, %v444_v9 }
  0xce   : > { %v424_v12 = vadd.f32 %v423_v10, %v422_v8  ;;  %v460_v3 = vrot.slane %v459_v11, 4 }
  0xd0   : > { %v425_v13 = vrot.slane %v424_v12, 2  ;;  %v461_v14 = vadd.f32 %v460_v3, %v459_v11 }
  0xd2   : > { %v426_v15 = vadd.f32 %v425_v13, %v424_v12  ;;  %v462_v16 = vrot.slane %v461_v14, 2 }
  0xd4   : > { %v427_v17 = vrot.slane %v426_v15, 1  ;;  %v463_v18 = vadd.f32 %v462_v16, %v461_v14 }
  0xd6   : > { %v464_v19 = vrot.slane %v463_v18, 1  ;;  %v428_v20 = vadd.f32 %v427_v17, %v426_v15 }
  0xd8   : > { %v465_v21 = vadd.f32 %v464_v19, %v463_v18 }
  0xda   : > { %v467_v22 = vsel %vm466_vm1, %v428_v20, %v465_v21 }
  0xdb   : > { %468 = vst [vmem:[%s236_s24] sm:$0x3] %v467_v22 }
  0xdc PF: > { %s14_s19 = sadd.s32 1, %s675_s19   ;;  %s823_s15 = smov %s667_s17 }
  0xdd   : > { %p11_p8 = scmp.ge.s32.totalorder %s14_s19, 6   ;;  %s824_s16 = smov %s671_s18 }
  0xde   : > { %s825_s17 = smov %s828_s20  ;;  %s826_s18 = smov %s832_s21 }
  0xdf   :  { %13 = sbr.rel (!%p11_p8) target bundleno = 3 (0x3), region = 66 }

// kernel: _lambda_.7
= control target key start
LH: loop header
LB: loop body
LE: loop exit
PB: predicated region body
PF: predicated region fallthrough
CT: control target
= control target key end

     0   :  { %s1281_s0 = inlined_call_operand.vmem [shape: f32[2,16,16,32], index: 0, kind: input, shape index: {}]   ;;  %s1282_s1 = inlined_call_operand.vmem [shape: f32[2,16,16,128], index: 1, kind: input, shape index: {}]   ;;  %s1283_s2 = inlined_call_operand.vmem [shape: f32[1,32], index: 2, kind: input, shape index: {}]   ;;  %s1284_s3 = inlined_call_operand.vmem [shape: f32[1,32], index: 3, kind: input, shape index: {}]   ;;  %s1285_s4 = inlined_call_operand.vmem [shape: f32[1,128], index: 4, kind: input, shape index: {}]   ;;  %s1286_s5 = inlined_call_operand.vmem [shape: f32[1,128], index: 5, kind: input, shape index: {}]   ;;  %s1287_s6 = inlined_call_operand.vmem [shape: bf16[32,128], index: 6, kind: input, shape index: {}]   ;;  %s1288_s7 = inlined_call_operand.hbm [shape: f32[2,16,16,128], index: 7, kind: output, shape index: {}]  }
   0x1   :  { %1289 = sst [smem:[#allocation5_spill]] %s1287_s6 }
   0x2   :  { %12 = vsyncpa [#allocation3], 0 }
   0x3   :  { %14 = vsyncpa [#allocation3 + $0x1], 0  ;;  %s1011_s24 = smov 0   ;;  %s1013_s25 = smov 0  }
   0x4   :  { %s1015_s26 = smov 0   ;;  %s1017_s27 = smov 0  }
   0x5   :  { %s1019_s28 = smov 0   ;;  %s1021_s29 = smov 0  }
   0x6   :  { %s1023_s30 = smov 0   ;;  %s1025_s8 = smov 0  }
   0x7 LB: > { %s750_s9 = sadd.s32 4294967295, %s967_s8   ;;  %s751_s10 = sadd.s32 4294967294, %s967_s8   ;;  %s967_s8 = sphi %s1025_s8, %s20_s8   ;;  %s963_s30 = sphi %s1023_s30, %s1299_s30   ;;  %s959_s29 = sphi %s1021_s29, %s1298_s29   ;;  %s955_s28 = sphi %s1019_s28, %s1297_s28   ;;  %s951_s27 = sphi %s1017_s27, %s1296_s27   ;;  %s947_s26 = sphi %s1015_s26, %s1295_s26   ;;  %s943_s25 = sphi %s1013_s25, %s1294_s25   ;;  %s939_s24 = sphi %s1011_s24, %s1293_s24  }
   0x8   : > { %s29_s11 = sadd.s32 1, %s959_s29  ;;  %s32_s12 = sadd.s32 1, %s963_s30 }
   0x9   : > { %p30_p0 = scmp.ge.s32.totalorder %s29_s11, 2  ;;  %p212_p1 = scmp.ne.s32.totalorder %s947_s26, %s943_s25 }
   0xa   : > { %p213_p2 = scmp.eq.s32.totalorder %s750_s9, 3  ;;  %p218_p5 = scmp.ne.s32.totalorder %s943_s25, %s939_s24 }
   0xb   : > { %s1301_s11 = smov (%p30_p0, %s29_s11), 0  ;;  %s1303_s12 = smov (!%p30_p0, %s32_s12), %s963_s30 }
   0xc   : > { %s198_s13 = ssub.s32 %s959_s29, %s1301_s11  ;;  %p1062_p3 = por %p213_p2, %p212_p1 }
   0xd   : > { %p34_p4 = scmp.ge.s32.totalorder %s1303_s12, 2  ;;  %p219_p6 = scmp.eq.s32.totalorder %s751_s10, 3 }
   0xe   : > { %p754_p7 = scmp.ge.s32.totalorder %s967_s8, 1  ;;  %p280_p9 = scmp.lt.s32.totalorder %s967_s8, 5 }
   0xf   : > { %s1305_s12 = smov (%p34_p4, %s1303_s12), 0  ;;  %p1071_p8 = por %p219_p6, %p218_p5 }
  0x10   : > { %s197_s16 = ssub.s32 %s963_s30, %s1305_s12  ;;  %s202_s17 = sadd.s32 1, %s947_s26 }
  0x11   : > { %s199_s18 = sor.u32 %s198_s13, %s197_s16  ;;  %p281_p10 = pnand %p754_p7, %p280_p9 }
  0x12   : > { %p200_p11 = scmp.eq.s32.totalorder %s199_s18, 0  ;;  %s1292_s6 = sld [smem:[#allocation5_spill]] (!%p281_p10) }
  0x13   : > { %284 = sbr.rel (%p281_p10) target bundleno = 210 (0xd2), region = 48  ;;  %s756_s22 = sshll.u32 (!%p281_p10), %s951_s27, 3 }
  0x14   : > { %s1080_s19 = scalar_select %p200_p11, %s947_s26, %s202_s17  }
  0x15   : > { %p328_p12 = scmp.lt.s32.totalorder (!%p281_p10), %s955_s28, 1  ;;  %p330_p13 = scmp.lt.s32.totalorder (!%p281_p10), %s756_s22, 15 }
  0x18   : > { %v788_v0 = vld [vmem:[%s1292_s6 + $0x8] sm:$0xff]  ;;  %v787_v1 = vld [vmem:[%s1292_s6] sm:$0xff]  ;;  %s329_s10 = scalar_select %p328_p12, %s955_s28, 1  ;;  %vm447_vm0 = vcmask 261120  }
  0x19   : > { %478 = vmatpush.bf16.msra.mxu0 %v788_v0  ;;  %790 = vmatpush.bf16.msra.mxu1 %v788_v0  ;;  %s1307_s22 = smov (!%p330_p13, %s756_s22), 15  ;;  %v869_v2 = vld [vmem:[%s1283_s2] ss:$0 sm:$0xff] }
  0x1a   : > { %791 = vmatpush.bf16.msra.mxu2 %v788_v0  ;;  %792 = vmatpush.bf16.msra.mxu3 %v788_v0  ;;  %s758_s13 = sshll.u32 %s329_s10, 5  ;;  %s757_s16 = sshll.u32 %s1307_s22, 1  ;;  %v1107_v3 = vld [vmem:[%s1284_s3] ss:$0 sm:$0xff] }
  0x1b   : > { %s1091_s17 = sadd.s32 %s758_s13, %s757_s16  ;;  %s324_s22 = sand.u32 1, %s943_s25  }
  0x1c   : > { %s759_s21 = sshll.u32 %s1091_s17, 3  ;;  %s755_s17 = sshll.u32 %s324_s22, 7 }
  0x1d   : > { %479 = vmatpush.bf16.msra.mxu0 %v787_v1  ;;  %793 = vmatpush.bf16.msra.mxu1 %v787_v1  ;;  %s1102_s6 = scalar_lea.vmem %s1281_s0, %s759_s21  ;;  %s1159_s20 = scalar_lea.vmem %s1282_s1, %s759_s21 }
  0x1e   : > { %794 = vmatpush.bf16.msra.mxu2 %v787_v1  ;;  %795 = vmatpush.bf16.msra.mxu3 %v787_v1  ;;  %v351_v4 = vld [vmem:[%s1102_s6] sm:$0xff]  ;;  %v352_v5 = vld [vmem:[%s1102_s6 + $0x8] sm:$0xff]  ;;  %v353_v30 = vld [vmem:[%s1102_s6 + $0x10] sm:$0xff]  ;;  %s1176_s21 = scalar_lea.vmem [#allocation2], %s755_s17  ;;  %s789_s10 = sshll.u32 %s951_s27, 4 }
  0x1f   : > { %v355_v6 = vld [vmem:[%s1102_s6 + $0x20] sm:$0xff]  ;;  %v371_v7 = vmul.f32 %v869_v2, %v351_v4  ;;  %v372_v8 = vmul.f32 %v869_v2, %v352_v5  ;;  %v356_v9 = vld [vmem:[%s1102_s6 + $0x28] sm:$0xff]  ;;  %v354_v35 = vld [vmem:[%s1102_s6 + $0x18] sm:$0xff]  ;;  %v373_v45 = vmul.f32 %v869_v2, %v353_v30  ;;  %s641_s23 = sshll.u32 %s1176_s21, 4  ;;  %s626_s17 = scalar_lea.sflag [#allocation3], %s324_s22  ;;  %s642_s23 = int_to_ptr.vmem [resolvable:$true] %s641_s23 }
  0x20   : > { %v375_v10 = vmul.f32 %v869_v2, %v355_v6  ;;  %v359_v11 = vld [vmem:[%s1102_s6 + $0x40] sm:$0xff]  ;;  %v360_v12 = vld [vmem:[%s1102_s6 + $0x48] sm:$0xff]  ;;  %v376_v13 = vmul.f32 %v869_v2, %v356_v9  ;;  %v357_v36 = vld [vmem:[%s1102_s6 + $0x30] sm:$0xff]  ;;  %v374_v46 = vmul.f32 %v869_v2, %v354_v35 }
  0x21   : > { %v379_v14 = vmul.f32 %v869_v2, %v359_v11  ;;  %v380_v15 = vmul.f32 %v869_v2, %v360_v12  ;;  %v363_v16 = vld [vmem:[%s1102_s6 + $0x60] sm:$0xff]  ;;  %v364_v17 = vld [vmem:[%s1102_s6 + $0x68] sm:$0xff]  ;;  %v391_v18 = vadd.f32 %v1107_v3, %v371_v7  ;;  %v392_v19 = vadd.f32 %v1107_v3, %v372_v8  ;;  %v358_v37 = vld [vmem:[%s1102_s6 + $0x38] sm:$0xff] }
  0x22   : > { %v395_v20 = vadd.f32 %v1107_v3, %v375_v10  ;;  %v383_v21 = vmul.f32 %v869_v2, %v363_v16  ;;  %v396_v22 = vadd.f32 %v1107_v3, %v376_v13  ;;  %v384_v25 = vmul.f32 %v869_v2, %v364_v17  ;;  %v361_v40 = vld [vmem:[%s1102_s6 + $0x50] sm:$0xff]  ;;  %v362_v41 = vld [vmem:[%s1102_s6 + $0x58] sm:$0xff]  ;;  %v1164_v13 = vld [vmem:[%s1286_s5] ss:$0 sm:$0xff] }
  0x23   : > { %v399_v23 = vadd.f32 %v1107_v3, %v379_v14  ;;  %v400_v24 = vadd.f32 %v1107_v3, %v380_v15  ;;  %v407_v26 = vmax.f32 %v391_v18, 0.0  ;;  %v408_v27 = vmax.f32 %v392_v19, 0.0  ;;  %v365_v49 = vld [vmem:[%s1102_s6 + $0x70] sm:$0xff]  ;;  %v366_v50 = vld [vmem:[%s1102_s6 + $0x78] sm:$0xff]  ;;  %v521_v17 = vld [vmem:[%s1159_s20] sm:$0xff]  ;;  %s783_s6 = sshll.u32 %s955_s28, 5 }
  0x24   : > { %v411_v28 = vmax.f32 %v395_v20, 0.0  ;;  %v403_v29 = vadd.f32 %v1107_v3, %v383_v21  ;;  %v412_v31 = vmax.f32 %v396_v22, 0.0  ;;  %v404_v34 = vadd.f32 %v1107_v3, %v384_v25  ;;  %v525_v20 = vld [vmem:[%s1159_s20 + $0x20] sm:$0xff]  ;;  %v522_v35 = vld [vmem:[%s1159_s20 + $0x8] sm:$0xff]  ;;  %s638_s27 = sadd.s32 %s789_s10, %s783_s6 }
  0x25   : > { %v415_v32 = vmax.f32 %v399_v23, 0.0  ;;  %v416_v33 = vmax.f32 %v400_v24, 0.0  ;;  %v423_v38 = vpack.c.bf16 %v408_v27, %v407_v26  ;;  %v377_v47 = vmul.f32 %v869_v2, %v357_v36  ;;  %s784_s28 = sshll.u32 %s638_s27, 3 }
  0x26   : > { %v419_v39 = vmax.f32 %v403_v29, 0.0  ;;  %v425_v42 = vpack.c.bf16 %v412_v31, %v411_v28  ;;  %v420_v44 = vmax.f32 %v404_v34, 0.0  ;;  %v378_v48 = vmul.f32 %v869_v2, %v358_v37  ;;  %v529_v29 = vld [vmem:[%s1159_s20 + $0x40] sm:$0xff]  ;;  %s640_s18 = scalar_lea.hbm %s1288_s7, %s784_s28  ;;  %s893_s28 = scalar_lea.hbm %s1288_s7, 512 }
  0x27   : > { %v427_v43 = vpack.c.bf16 %v416_v33, %v415_v32  ;;  %772 = vmatmul.msk.bf16.vlgmr.msra.gmra.mxu0 %vm447_vm0, %v423_v38  ;;  %v381_v52 = vmul.f32 %v869_v2, %v361_v40  ;;  %v382_v53 = vmul.f32 %v869_v2, %v362_v41  ;;  %v385_v54 = vmul.f32 %v869_v2, %v365_v49  ;;  %v533_v37 = vld [vmem:[%s1159_s20 + $0x60] sm:$0xff]  ;;  %s643_s9 = sshll.u32 %s640_s18, 4  ;;  %s644_s9 = int_to_ptr.hbm [resolvable:$true] %s643_s9 }
  0x28   : > { %774 = vmatmul.msk.bf16.vlgmr.msra.gmra.mxu1 %vm447_vm0, %v425_v42  ;;  %v429_v51 = vpack.c.bf16 %v420_v44, %v419_v39  ;;  %v386_v55 = vmul.f32 %v869_v2, %v366_v50  ;;  %v393_v56 = vadd.f32 %v1107_v3, %v373_v45  ;;  %v394_v57 = vadd.f32 %v1107_v3, %v374_v46  ;;  %v526_v39 = vld [vmem:[%s1159_s20 + $0x28] sm:$0xff]  ;;  %s887_s10 = sshra.s32 %s644_s9, 4  ;;  %s888_s10 = int_to_ptr.hbm [resolvable:$true] %s887_s10 }
  0x29   : > { %776 = vmatmul.msk.bf16.vlgmr.msra.gmra.mxu2 %vm447_vm0, %v427_v43  ;;  %v397_v58 = vadd.f32 %v1107_v3, %v377_v47  ;;  %v398_v59 = vadd.f32 %v1107_v3, %v378_v48  ;;  %v401_v60 = vadd.f32 %v1107_v3, %v381_v52  ;;  %v402_v61 = vadd.f32 %v1107_v3, %v382_v53  ;;  %v530_v53 = vld [vmem:[%s1159_s20 + $0x48] sm:$0xff]  ;;  %s889_s6 = scalar_lea.hbm %s888_s10, 128  ;;  %p894_p4 = scmp.lt.s32.totalorder %s888_s10, %s1288_s7 }
  0x2a   : > { %778 = vmatmul.msk.bf16.vlgmr.msra.gmra.mxu3 %vm447_vm0, %v429_v51  ;;  %v405_v62 = vadd.f32 %v1107_v3, %v385_v54  ;;  %v406_v63 = vadd.f32 %v1107_v3, %v386_v55  ;;  %v409_v0 = vmax.f32 %v393_v56, 0.0  ;;  %v410_v1 = vmax.f32 %v394_v57, 0.0  ;;  %v1152_v3 = vld [vmem:[%s1285_s4] ss:$0 sm:$0xff]  ;;  %p890_p0 = scmp.ne.s32.totalorder %s888_s10, %s889_s6  ;;  %p895_p5 = scmp.lt.s32.totalorder %s893_s28, %s889_s6 }
  0x2b   : > { %v413_v2 = vmax.f32 %v397_v58, 0.0  ;;  %v414_v4 = vmax.f32 %v398_v59, 0.0  ;;  %v417_v5 = vmax.f32 %v401_v60, 0.0  ;;  %v418_v6 = vmax.f32 %v402_v61, 0.0  ;;  %v523_v59 = vld [vmem:[%s1159_s20 + $0x10] sm:$0xff]  ;;  %v534_v61 = vld [vmem:[%s1159_s20 + $0x68] sm:$0xff] }
  0x2c   : > { %v421_v7 = vmax.f32 %v405_v62, 0.0  ;;  %v422_v8 = vmax.f32 %v406_v63, 0.0  ;;  %v424_v9 = vpack.c.bf16 %v410_v1, %v409_v0  ;;  %v527_v63 = vld [vmem:[%s1159_s20 + $0x30] sm:$0xff]  ;;  %p891_p1 = pnand %p890_p0, %p1062_p3  ;;  %p896_p6 = por %p895_p5, %p894_p4 }
  0x2d   : > { %v426_v10 = vpack.c.bf16 %v414_v4, %v413_v2  ;;  %v428_v11 = vpack.c.bf16 %v418_v6, %v417_v5 }
  0x2e   : > { %v430_v12 = vpack.c.bf16 %v422_v8, %v421_v7  ;;  %p892_p2 = pneg %p891_p1 }
  0x30   : > { %p897_p7 = pnand %p896_p6, %p892_p2 }
  0x37   : > { %773 = vmatmul.msk.bf16.gmra.mxu0 %vm447_vm0, %v424_v9 }
  0x38   : > { %775 = vmatmul.msk.bf16.gmra.mxu1 %vm447_vm0, %v426_v10 }
  0x39   : > { %777 = vmatmul.msk.bf16.gmra.mxu2 %vm447_vm0, %v428_v11 }
  0x3a   : > { %779 = vmatmul.msk.bf16.gmra.mxu3 %vm447_vm0, %v430_v12 }
  0xa4   : > { %v481_v14 = vpop.f32.mrf.mxu0 }
  0xa5   : > { %v541_v15 = vmul.f32 %v1152_v3, %v481_v14  ;;  %v491_v16 = vpop.f32.mrf.mxu1 }
  0xa6   : > { %v545_v18 = vmul.f32 %v1152_v3, %v491_v16 }
  0xa7   : > { %v561_v19 = vadd.f32 %v1164_v13, %v541_v15  ;;  %v531_v15 = vld [vmem:[%s1159_s20 + $0x50] sm:$0xff] }
  0xa8   : > { %v565_v21 = vadd.f32 %v1164_v13, %v545_v18 }
  0xa9   : > { %v577_v22 = vadd.f32 %v561_v19, %v521_v17 }
  0xaa   : > { %v581_v23 = vadd.f32 %v565_v21, %v525_v20  ;;  %v524_v21 = vld [vmem:[%s1159_s20 + $0x18] sm:$0xff] }
  0xab   : > { %v593_v24 = vmax.f32 %v577_v22, 0.0 }
  0xac   : > { %v501_v25 = vpop.f32.mrf.mxu2  ;;  %v597_v26 = vmax.f32 %v581_v23, 0.0  ;;  %v483_v28 = vpop.f32.mrf.mxu0  ;;  %v535_v23 = vld [vmem:[%s1159_s20 + $0x70] sm:$0xff] }
  0xad   : > { %v549_v27 = vmul.f32 %v1152_v3, %v501_v25  ;;  %609 = vst [vmem:[%s1176_s21] sm:$0xff] %v593_v24  ;;  %v511_v30 = vpop.f32.mrf.mxu3  ;;  %v542_v31 = vmul.f32 %v1152_v3, %v483_v28  ;;  %v493_v32 = vpop.f32.mrf.mxu1  ;;  %v528_v25 = vld [vmem:[%s1159_s20 + $0x38] sm:$0xff] }
  0xae   : > { %613 = vst [vmem:[%s1176_s21 + $0x20] sm:$0xff] %v597_v26  ;;  %v553_v34 = vmul.f32 %v1152_v3, %v511_v30  ;;  %v546_v36 = vmul.f32 %v1152_v3, %v493_v32 }
  0xaf   : > { %v569_v33 = vadd.f32 %v1164_v13, %v549_v27  ;;  %v562_v38 = vadd.f32 %v1164_v13, %v542_v31 }
  0xb0   : > { %v573_v41 = vadd.f32 %v1164_v13, %v553_v34  ;;  %v566_v42 = vadd.f32 %v1164_v13, %v546_v36 }
  0xb1   : > { %v585_v40 = vadd.f32 %v569_v33, %v529_v29  ;;  %v578_v43 = vadd.f32 %v562_v38, %v522_v35  ;;  %v532_v38 = vld [vmem:[%s1159_s20 + $0x58] sm:$0xff] }
  0xb2   : > { %v589_v45 = vadd.f32 %v573_v41, %v533_v37  ;;  %v582_v46 = vadd.f32 %v566_v42, %v526_v39  ;;  %v536_v42 = vld [vmem:[%s1159_s20 + $0x78] sm:$0xff] }
  0xb3   : > { %v601_v44 = vmax.f32 %v585_v40, 0.0  ;;  %v594_v47 = vmax.f32 %v578_v43, 0.0 }
  0xb4   : > { %v503_v48 = vpop.f32.mrf.mxu2  ;;  %v605_v49 = vmax.f32 %v589_v45, 0.0  ;;  %v598_v50 = vmax.f32 %v582_v46, 0.0  ;;  %v486_v52 = vpop.f32.mrf.mxu0 }
  0xb5   : > { %617 = vst [vmem:[%s1176_s21 + $0x40] sm:$0xff] %v601_v44  ;;  %v550_v51 = vmul.f32 %v1152_v3, %v503_v48  ;;  %v513_v54 = vpop.f32.mrf.mxu3  ;;  %v543_v55 = vmul.f32 %v1152_v3, %v486_v52  ;;  %v496_v56 = vpop.f32.mrf.mxu1 }
  0xb6   : > { %610 = vst [vmem:[%s1176_s21 + $0x8] sm:$0xff] %v594_v47  ;;  %v554_v58 = vmul.f32 %v1152_v3, %v513_v54  ;;  %v547_v60 = vmul.f32 %v1152_v3, %v496_v56 }
  0xb7   : > { %621 = vst [vmem:[%s1176_s21 + $0x60] sm:$0xff] %v605_v49  ;;  %v570_v57 = vadd.f32 %v1164_v13, %v550_v51  ;;  %v563_v62 = vadd.f32 %v1164_v13, %v543_v55 }
  0xb8   : > { %614 = vst [vmem:[%s1176_s21 + $0x28] sm:$0xff] %v598_v50  ;;  %v574_v1 = vadd.f32 %v1164_v13, %v554_v58  ;;  %v567_v2 = vadd.f32 %v1164_v13, %v547_v60 }
  0xb9   : > { %v586_v0 = vadd.f32 %v570_v57, %v530_v53  ;;  %v579_v4 = vadd.f32 %v563_v62, %v523_v59 }
  0xba   : > { %v590_v6 = vadd.f32 %v574_v1, %v534_v61  ;;  %v583_v7 = vadd.f32 %v567_v2, %v527_v63 }
  0xbb   : > { %v602_v5 = vmax.f32 %v586_v0, 0.0  ;;  %v595_v8 = vmax.f32 %v579_v4, 0.0 }
  0xbc   : > { %v506_v9 = vpop.f32.mrf.mxu2  ;;  %v606_v10 = vmax.f32 %v590_v6, 0.0  ;;  %v599_v11 = vmax.f32 %v583_v7, 0.0  ;;  %v488_v14 = vpop.f32.mrf.mxu0 }
  0xbd   : > { %618 = vst [vmem:[%s1176_s21 + $0x48] sm:$0xff] %v602_v5  ;;  %v551_v12 = vmul.f32 %v1152_v3, %v506_v9  ;;  %v516_v16 = vpop.f32.mrf.mxu3  ;;  %v544_v17 = vmul.f32 %v1152_v3, %v488_v14  ;;  %v498_v18 = vpop.f32.mrf.mxu1 }
  0xbe   : > { %611 = vst [vmem:[%s1176_s21 + $0x10] sm:$0xff] %v595_v8  ;;  %v555_v20 = vmul.f32 %v1152_v3, %v516_v16  ;;  %v548_v22 = vmul.f32 %v1152_v3, %v498_v18 }
  0xbf   : > { %622 = vst [vmem:[%s1176_s21 + $0x68] sm:$0xff] %v606_v10  ;;  %v571_v19 = vadd.f32 %v1164_v13, %v551_v12  ;;  %v564_v24 = vadd.f32 %v1164_v13, %v544_v17 }
  0xc0   : > { %615 = vst [vmem:[%s1176_s21 + $0x30] sm:$0xff] %v599_v11  ;;  %v575_v27 = vadd.f32 %v1164_v13, %v555_v20  ;;  %v568_v28 = vadd.f32 %v1164_v13, %v548_v22 }
  0xc1   : > { %v587_v26 = vadd.f32 %v571_v19, %v531_v15  ;;  %v580_v29 = vadd.f32 %v564_v24, %v524_v21 }
  0xc2   : > { %v591_v31 = vadd.f32 %v575_v27, %v535_v23  ;;  %v584_v32 = vadd.f32 %v568_v28, %v528_v25 }
  0xc3   : > { %v603_v30 = vmax.f32 %v587_v26, 0.0  ;;  %v596_v33 = vmax.f32 %v580_v29, 0.0 }
  0xc4   : > { %v508_v34 = vpop.f32.mrf.mxu2  ;;  %v607_v35 = vmax.f32 %v591_v31, 0.0  ;;  %v600_v36 = vmax.f32 %v584_v32, 0.0 }
  0xc5   : > { %619 = vst [vmem:[%s1176_s21 + $0x50] sm:$0xff] %v603_v30  ;;  %v552_v37 = vmul.f32 %v1152_v3, %v508_v34  ;;  %v518_v39 = vpop.f32.mrf.mxu3 }
  0xc6   : > { %612 = vst [vmem:[%s1176_s21 + $0x18] sm:$0xff] %v596_v33  ;;  %v556_v41 = vmul.f32 %v1152_v3, %v518_v39 }
  0xc7   : > { %623 = vst [vmem:[%s1176_s21 + $0x70] sm:$0xff] %v607_v35  ;;  %v572_v40 = vadd.f32 %v1164_v13, %v552_v37 }
  0xc8   : > { %616 = vst [vmem:[%s1176_s21 + $0x38] sm:$0xff] %v600_v36  ;;  %v576_v44 = vadd.f32 %v1164_v13, %v556_v41 }
  0xc9   : > { %v588_v43 = vadd.f32 %v572_v40, %v532_v38 }
  0xca   : > { %v592_v46 = vadd.f32 %v576_v44, %v536_v42 }
  0xcb   : > { %v604_v45 = vmax.f32 %v588_v43, 0.0 }
  0xcc   : > { %v608_v47 = vmax.f32 %v592_v46, 0.0 }
  0xcd   : > { %620 = vst [vmem:[%s1176_s21 + $0x58] sm:$0xff] %v604_v45 }
  0xce   : > { %624 = vst [vmem:[%s1176_s21 + $0x78] sm:$0xff] %v608_v47 }
  0xcf   : > { %900 = shalt.err (!%p897_p7)
}
  0xd0   : > { %s969_s22 = smov 128   ;;  %s970_s21 = smov 8  }
  0xd1   : > { %796 = dma.vmem_to_hbm [thread:$0]  (%p1062_p3), %s642_s23, 2048, %s644_s9, %s626_s17, %s969_s22, %s969_s22, %s970_s21  }
  0xd2 PF: > { %p802_p9 = scmp.ge.s32.totalorder %s967_s8, 2  ;;  %s658_s18 = sand.u32 1, %s939_s24  }
  0xd3   : > { %s659_s20 = scalar_lea.sflag [#allocation3], %s658_s18 }
  0xd4   : > { %p799_p10 = pnand %p802_p9, %p1071_p8 }
  0xd6   : > { %p800_p11 = pneg %p799_p10 }
  0xd8   : > { %934 = dma.done.wait (%p800_p11), %s659_s20, 2048  }
  0xd9   : > { %936 = vsyncadd (%p800_p11), %s659_s20, 4294965248  ;;  %s20_s8 = sadd.s32 1, %s967_s8   ;;  %s1293_s24 = smov %s943_s25 }
  0xda   : > { %p17_p12 = scmp.ge.s32.totalorder %s20_s8, 6   ;;  %s1294_s25 = smov %s947_s26 }
  0xdb   : > { %s1295_s26 = smov %s1080_s19  ;;  %s1296_s27 = smov %s959_s29 }
  0xdc   : > { %s1297_s28 = smov %s963_s30  ;;  %s1298_s29 = smov %s1301_s11 }
  0xdd   : > { %s1299_s30 = smov %s1305_s12  ;;  %19 = sbr.rel (!%p17_p12) target bundleno = 7 (0x7), region = 86 }
  0xe2   :  { %665 = vsyncpa [#allocation3], 1 }
  0xe3   :  { %667 = vsyncpa [#allocation3 + $0x1], 1 }

// kernel: _lambda_.5
= control target key start
LH: loop header
LB: loop body
LE: loop exit
PB: predicated region body
PF: predicated region fallthrough
CT: control target
= control target key end

     0   :  { %s1882_s24 = smov 0   ;;  %s1884_s25 = smov 0   ;;  %s2506_s0 = inlined_call_operand.vmem [shape: f32[2,16,16,32], index: 0, kind: input, shape index: {}, may-alias: {0,1,2}]   ;;  %s2507_s1 = inlined_call_operand.vmem [shape: f32[2,16,16,32], index: 1, kind: input, shape index: {}, may-alias: {0,1,2}]   ;;  %s2508_s2 = inlined_call_operand.vmem [shape: f32[2,16,16,32], index: 2, kind: input, shape index: {}, may-alias: {0,1,2}]   ;;  %s2509_s3 = inlined_call_operand.vmem [shape: f32[1,32], index: 3, kind: input, shape index: {}]   ;;  %s2510_s4 = inlined_call_operand.vmem [shape: f32[1,32], index: 4, kind: input, shape index: {}]   ;;  %s2511_s5 = inlined_call_operand.vmem [shape: bf16[3,96,32], index: 5, kind: input, shape index: {}]   ;;  %s2512_s6 = inlined_call_operand.vmem [shape: f32[2,16,16,32], index: 6, kind: output, shape index: {0}]   ;;  %s2513_s7 = inlined_call_operand.vmem [shape: f32[2,2,2,32], index: 7, kind: output, shape index: {1}]  }
   0x1   :  { %s1886_s26 = smov 0   ;;  %s1888_s27 = smov 0  }
   0x2   :  { %s1890_s28 = smov 0  }
   0x3 LB: > { %s27_s29 = sadd.s32 1, %s1829_s26  ;;  %s30_s30 = sadd.s32 1, %s1833_s27  ;;  %s1837_s28 = sphi %s1890_s28, %s18_s28   ;;  %s1833_s27 = sphi %s1888_s27, %s2520_s27   ;;  %s1829_s26 = sphi %s1886_s26, %s2519_s26   ;;  %s1825_s25 = sphi %s1884_s25, %s2518_s25   ;;  %s1821_s24 = sphi %s1882_s24, %s2517_s24  }
   0x4   : > { %p28_p0 = scmp.ge.s32.totalorder %s27_s29, 2  ;;  %p1560_p1 = scmp.ge.s32.totalorder %s1837_s28, 1 }
   0x5   : > { %p328_p2 = scmp.lt.s32.totalorder %s1837_s28, 5 }
   0x6   : > { %s2522_s29 = smov (%p28_p0, %s27_s29), 0  ;;  %s2524_s30 = smov (!%p28_p0, %s30_s30), %s1833_s27 }
   0x7   : > { %p329_p3 = pnand %p1560_p1, %p328_p2  ;;  %p32_p4 = scmp.ge.s32.totalorder %s2524_s30, 2 }
   0x8   : > { %s1915_s8 = sshll.u32 (!%p329_p3), %s1821_s24, 3  ;;  %p405_p5 = scmp.lt.s32.totalorder (!%p329_p3), %s1825_s25, 1 }
   0x9   : > { %s2526_s30 = smov (%p32_p4, %s2524_s30), 0  ;;  %332 = sbr.rel (%p329_p3) target bundleno = 447 (0x1bf), region = 44 }
   0xa   : > { %p407_p6 = scmp.lt.s32.totalorder (!%p329_p3), %s1915_s8, 15  ;;  %s1566_s12 = sadd.s32 (!%p329_p3), 4294967295, %s1915_s8 }
   0xb   : > { %p417_p7 = scmp.gt.s32.totalorder (!%p329_p3), %s1566_s12, 0  ;;  %p1567_p8 = scmp.lt.s32.totalorder (!%p329_p3), %s1566_s12, 15 }
   0xc   : > { %p557_p9 = scmp.gt.s32.totalorder (!%p329_p3), %s1821_s24, 0  ;;  %s1717_s23 = sadd.s32 (!%p329_p3), 8, %s1915_s8 }
   0xd   : > { %p1955_p10 = scmp.lt.s32.totalorder (!%p329_p3), %s1717_s23, 15  ;;  %p462_p11 = scmp.lt.s32.totalorder (!%p329_p3), %s1821_s24, 1 }
   0xe   : > { %s2528_s25 = smov (!%p405_p5, %s1825_s25), 1  ;;  %v1931_v0 = vld [vmem:[%s2509_s3] ss:$0 sm:$0xff]  ;;  %s2530_s12 = smov (!%p417_p7, %s1566_s12), 0  ;;  %v2096_v61 = vld [vmem:[%s2511_s5 + $0x88] sm:$0xff]  ;;  %vm649_vm2 = vcmask 523520  }
   0xf   : > { %s408_s9 = scalar_select %p407_p6, %s1915_s8, 15  ;;  %v1944_v1 = vld [vmem:[%s2510_s4] ss:$0 sm:$0xff]  ;;  %1189 = vmatpush.bf16.msra.mxu2 %v2096_v61  ;;  %vm692_vm3 = vcmask 253952   ;;  %vm670_vm4 = vcmask 261120   ;;  %vm672_vm5 = vcmask 260096  }
  0x10   : > { %s1922_s10 = sshll.u32 %s2528_s25, 5  ;;  %s2532_s12 = smov (!%p1567_p8, %s2530_s12), 15  ;;  %vm785_vm6 = vcmask 778752   ;;  %vm763_vm7 = vcmask 785921   ;;  %vm765_vm8 = vcmask 785920   ;;  %vm906_vm9 = vcmask 785408  }
  0x11   : > { %s1562_s11 = sshll.u32 %s408_s9, 1  ;;  %s1572_s9 = sshll.u32 %s2532_s12, 1  ;;  %vm1358_vm10 = vcmask 1040384   ;;  %vm1360_vm11 = vcmask 254976  }
  0x12   : > { %s1926_s13 = sadd.s32 %s1922_s10, %s1562_s11  ;;  %s425_s14 = sadd.s32 %s1572_s9, %s1922_s10 }
  0x13   : > { %s1564_s16 = sshll.u32 %s1926_s13, 3  ;;  %s1574_s15 = sshll.u32 %s425_s14, 3 }
  0x14   : > { %s1939_s19 = scalar_lea.vmem %s2506_s0, %s1564_s16  ;;  %s1839_s17 = smov 64  }
  0x15   : > { %v473_v2 = vld [vmem:[%s1939_s19 + $0x10] sm:$0xff]  ;;  %v474_v3 = vld [vmem:[%s1939_s19 + $0x18] sm:$0xff]  ;;  %s1950_s22 = scalar_select %p557_p9, 1, 0  ;;  %v472_v9 = vld [vmem:[%s1939_s19 + $0x8] sm:$0xff] }
  0x16   : > { %v492_v4 = vmul.f32 %v1931_v0, %v473_v2  ;;  %v493_v6 = vmul.f32 %v1931_v0, %v474_v3  ;;  %s1840_s8 = smov 32   ;;  %s427_s20 = scalar_lea.vmem %s2507_s1, %s1574_s15  ;;  %v471_v10 = vld [vmem:[%s1939_s19] sm:$0xff]  ;;  %v491_v15 = vmul.f32 %v1931_v0, %v472_v9  ;;  %v484_v30 = vld [vmem:[%s1939_s19 + $0x68] sm:$0xff]  ;;  %v485_v45 = vld [vmem:[%s1939_s19 + $0x70] sm:$0xff] }
  0x17   : > { %s1586_s21 = sshll.u32 %s2528_s25, 1  ;;  %v541_v11 = vld [vmem:[%s427_s20] sm:$0xff]  ;;  %v542_v12 = vld [vmem:[%s427_s20 + $0x8] sm:$0xff]  ;;  %s2534_s23 = smov (!%p1955_p10, %s1717_s23), 15  ;;  %v559_v14 = vstv %s1950_s22  ;;  %v490_v17 = vmul.f32 %v1931_v0, %v471_v10  ;;  %v503_v32 = vmul.f32 %v1931_v0, %v484_v30  ;;  %v486_v46 = vld [vmem:[%s1939_s19 + $0x78] sm:$0xff]  ;;  %v504_v48 = vmul.f32 %v1931_v0, %v485_v45 }
  0x18   : > { %v511_v5 = vadd.f32 %v1944_v1, %v492_v4  ;;  %v512_v8 = vadd.f32 %v1944_v1, %v493_v6  ;;  %v543_v13 = vmul.f32 %v1931_v0, %v541_v11  ;;  %s463_s9 = scalar_select %p462_p11, %s1821_s24, 1  ;;  %v544_v19 = vmul.f32 %v1931_v0, %v542_v12  ;;  %v483_v31 = vld [vmem:[%s1939_s19 + $0x60] sm:$0xff]  ;;  %v476_v41 = vld [vmem:[%s1939_s19 + $0x28] sm:$0xff]  ;;  %v478_v52 = vld [vmem:[%s1939_s19 + $0x38] sm:$0xff] }
  0x19   : > { %s2536_s23 = smov (!%p1955_p10, %s2534_s23), 15  ;;  %vm1991_vm0 = vcmp.eq.s32.totalorder %v559_v14, 1  ;;  %v510_v22 = vadd.f32 %v1944_v1, %v491_v15  ;;  %v509_v23 = vadd.f32 %v1944_v1, %v490_v17  ;;  %v502_v33 = vmul.f32 %v1931_v0, %v483_v31  ;;  %v475_v36 = vld [vmem:[%s1939_s19 + $0x20] sm:$0xff]  ;;  %v477_v53 = vld [vmem:[%s1939_s19 + $0x30] sm:$0xff]  ;;  %v482_v4 = vld [vmem:[%s1939_s19 + $0x58] sm:$0xff]  ;;  %s2403_s14 = scalar_lea.vmem %s2512_s6, %s1564_s16 }
  0x1a   : > { %v1959_v7 = vmax.f32 %v511_v5, 0.0  ;;  %v1984_v16 = vmax.f32 %v512_v8, 0.0  ;;  %v545_v18 = vadd.f32 %v1944_v1, %v543_v13  ;;  %s1989_s25 = sadd.s32 %s1586_s21, %s463_s9  ;;  %s1995_s22 = sshll.u32 %s2536_s23, 1  ;;  %v546_v25 = vadd.f32 %v1944_v1, %v544_v19  ;;  %v481_v60 = vld [vmem:[%s1939_s19 + $0x50] sm:$0xff]  ;;  %v480_v9 = vld [vmem:[%s1939_s19 + $0x48] sm:$0xff]  ;;  %v479_v10 = vld [vmem:[%s1939_s19 + $0x40] sm:$0xff] }
  0x1b   : > { %s442_s11 = sadd.s32 %s1995_s22, %s1922_s10  ;;  %v2012_v26 = vmax.f32 %v510_v22, 0.0  ;;  %v2014_v27 = vmax.f32 %v509_v23, 0.0  ;;  %v522_v34 = vadd.f32 %v1944_v1, %v503_v32  ;;  %v521_v35 = vadd.f32 %v1944_v1, %v502_v33  ;;  %v2146_v19 = vld [vmem:[%s2511_s5 + $0x80] sm:$0xff]  ;;  %v2158_v22 = vld [vmem:[%s2511_s5 + $0x78] sm:$0xff]  ;;  %s1587_s13 = sshll.u32 %s1989_s25, 1 }
  0x1c   : > { %711 = vrot.lane.b32.xlu1 %v1959_v7, %s1839_s17  ;;  %597 = vrot.lane.b32.xlu0 %v1959_v7, %s1840_s8  ;;  %v547_v21 = vmax.f32 %v545_v18, 0.0  ;;  %v548_v28 = vmax.f32 %v546_v25, 0.0  ;;  %v494_v39 = vmul.f32 %v1931_v0, %v475_v36  ;;  %v495_v43 = vmul.f32 %v1931_v0, %v476_v41  ;;  %s1581_s15 = sshll.u32 %s442_s11, 3  ;;  %v1729_v36 = vld [vmem:[%s2511_s5 + $0x58] sm:$0xff]  ;;  %v1722_v41 = vld [vmem:[%s2511_s5 + $0x20] sm:$0xff]  ;;  %s467_s12 = scalar_lea.vmem %s2513_s7, %s1587_s13 }
  0x1d   : > { %v2039_v37 = vmax.f32 %v522_v34, 0.0  ;;  %v2041_v38 = vmax.f32 %v521_v35, 0.0  ;;  %v505_v49 = vmul.f32 %v1931_v0, %v486_v46  ;;  %v523_v50 = vadd.f32 %v1944_v1, %v504_v48  ;;  %s444_s20 = scalar_lea.vmem %s2508_s2, %s1581_s15  ;;  %1190 = vmatpush.bf16.msra.mxu2 %v2146_v19  ;;  %v2175_v34 = vld [vmem:[%s2511_s5 + $0x70] sm:$0xff]  ;;  %933 = vmatpush.bf16.msra.mxu0 %v1729_v36  ;;  %v2210_v45 = vld [vmem:[%s2511_s5 + $0x60] sm:$0xff]  ;;  %v1727_v46 = vld [vmem:[%s2511_s5 + $0x48] sm:$0xff] }
  0x1e   : > { %v2007_v24 = vsel %vm1991_vm0, %v547_v21, 0.0  ;;  %v2022_v29 = vsel %vm1991_vm0, %v548_v28, 0.0  ;;  %v513_v40 = vadd.f32 %v1944_v1, %v494_v39  ;;  %v514_v44 = vadd.f32 %v1944_v1, %v495_v43  ;;  %v549_v17 = vld [vmem:[%s444_s20] sm:$0xff]  ;;  %s564_s21 = scalar_select %p462_p11, 1, 0  ;;  %v550_v30 = vld [vmem:[%s444_s20 + $0x8] sm:$0xff]  ;;  %1736 = vmatpush.bf16.msra.mxu3 %v1729_v36 }
  0x1f   : > { %589 = vrot.lane.b32.xlu2 %v2007_v24, %s1840_s8  ;;  %v524_v51 = vadd.f32 %v1944_v1, %v505_v49  ;;  %v2078_v54 = vmax.f32 %v523_v50, 0.0  ;;  %v497_v56 = vmul.f32 %v1931_v0, %v478_v52  ;;  %v496_v57 = vmul.f32 %v1931_v0, %v477_v53  ;;  %v2191_v39 = vld [vmem:[%s2511_s5 + $0x68] sm:$0xff]  ;;  %v1721_v48 = vld [vmem:[%s2511_s5 + $0x18] sm:$0xff]  ;;  %v1726_v49 = vld [vmem:[%s2511_s5 + $0x40] sm:$0xff] }
  0x20   : > { %v2052_v42 = vmax.f32 %v513_v40, 0.0  ;;  %v2064_v47 = vmax.f32 %v514_v44, 0.0  ;;  %v500_v2 = vmul.f32 %v1931_v0, %v481_v60  ;;  %v501_v6 = vmul.f32 %v1931_v0, %v482_v4  ;;  %v1728_v40 = vld [vmem:[%s2511_s5 + $0x50] sm:$0xff]  ;;  %v1725_v52 = vld [vmem:[%s2511_s5 + $0x38] sm:$0xff]  ;;  %v1719_v53 = vld [vmem:[%s2511_s5 + $0x8] sm:$0xff] }
  0x21   : > { %v2080_v55 = vmax.f32 %v524_v51, 0.0  ;;  %v516_v58 = vadd.f32 %v1944_v1, %v497_v56  ;;  %v515_v59 = vadd.f32 %v1944_v1, %v496_v57  ;;  %v499_v12 = vmul.f32 %v1931_v0, %v480_v9  ;;  %1191 = vmatpush.bf16.msra.mxu2 %v2158_v22  ;;  %934 = vmatpush.bf16.msra.mxu0 %v1728_v40  ;;  %v1720_v50 = vld [vmem:[%s2511_s5 + $0x10] sm:$0xff] }
  0x22   : > { %v519_v3 = vadd.f32 %v1944_v1, %v500_v2  ;;  %v520_v8 = vadd.f32 %v1944_v1, %v501_v6  ;;  %v498_v13 = vmul.f32 %v1931_v0, %v479_v10  ;;  %v551_v18 = vmul.f32 %v1931_v0, %v549_v17  ;;  %1737 = vmatpush.bf16.msra.mxu3 %v1728_v40 }
  0x23   : > { %v2099_v62 = vmax.f32 %v516_v58, 0.0  ;;  %v2101_v63 = vmax.f32 %v515_v59, 0.0  ;;  %v518_v14 = vadd.f32 %v1944_v1, %v499_v12  ;;  %v565_v25 = vstv %s564_s21 }
  0x24   : > { %713 = vrot.lane.b32.xlu1 %v1984_v16, %s1839_s17  ;;  %599 = vrot.lane.b32.xlu0 %v1984_v16, %s1840_s8  ;;  %v2112_v5 = vmax.f32 %v519_v3, 0.0  ;;  %v2127_v11 = vmax.f32 %v520_v8, 0.0  ;;  %v517_v15 = vadd.f32 %v1944_v1, %v498_v13  ;;  %v553_v23 = vadd.f32 %v1944_v1, %v551_v18 }
  0x25   : > { %v2150_v20 = vmax.f32 %v518_v14, 0.0  ;;  %vm566_vm1 = vcmp.eq.s32.totalorder %v565_v25, 1  ;;  %v552_v31 = vmul.f32 %v1931_v0, %v550_v30  ;;  %1192 = vmatpush.bf16.msra.mxu2 %v2175_v34  ;;  %v1723_v0 = vld [vmem:[%s2511_s5 + $0x28] sm:$0xff]  ;;  %v1841_v44 = vmov 0.0   ;;  %935 = vmatpush.bf16.msra.mxu0 %v1727_v46 }
  0x26   : > { %v2152_v21 = vmax.f32 %v517_v15, 0.0  ;;  %v555_v28 = vmax.f32 %v553_v23, 0.0  ;;  %1042 = vmatpush.bf16.msra.mxu1 %v1723_v0  ;;  %1738 = vmatpush.bf16.msra.mxu3 %v1727_v46 }
  0x27   : > { %591 = vrot.lane.b32.xlu2 %v2022_v29, %s1840_s8  ;;  %v554_v32 = vadd.f32 %v1944_v1, %v552_v31 }
  0x28   : > { %v2170_v33 = vsel %vm566_vm1, %v555_v28, 0.0 }
  0x29   : > { %v556_v35 = vmax.f32 %v554_v32, 0.0  ;;  %1193 = vmatpush.bf16.msra.mxu2 %v2191_v39  ;;  %936 = vmatpush.bf16.msra.mxu0 %v1726_v49 }
  0x2a   : > { %1043 = vmatpush.bf16.msra.mxu1 %v1722_v41  ;;  %1739 = vmatpush.bf16.msra.mxu3 %v1726_v49 }
  0x2b   : > { %v2186_v1 = vsel %vm566_vm1, %v556_v35, 0.0 }
  0x2c   : > { %595 = vrot.lane.b32.xlu1 %v2012_v26, %s1840_s8  ;;  %593 = vrot.lane.b32.xlu0 %v2014_v27, %s1840_s8 }
  0x2d   : > { %1194 = vmatpush.bf16.msra.mxu2 %v2210_v45  ;;  %937 = vmatpush.bf16.msra.mxu0 %v1725_v52 }
  0x2e   : > { %1044 = vmatpush.bf16.msra.mxu1 %v1721_v48  ;;  %1740 = vmatpush.bf16.msra.mxu3 %v1725_v52 }
  0x2f   : > { %703 = vrot.lane.b32.xlu2 %v2007_v24, %s1839_s17 }
  0x32   : > { %1045 = vmatpush.bf16.msra.mxu1 %v1720_v50 }
  0x34   : > { %707 = vrot.lane.b32.xlu1 %v2014_v27, %s1839_s17  ;;  %705 = vrot.lane.b32.xlu0 %v2022_v29, %s1839_s17 }
  0x36   : > { %1046 = vmatpush.bf16.msra.mxu1 %v1719_v53 }
  0x37   : > { %709 = vrot.lane.b32.xlu2 %v2012_v26, %s1839_s17 }
  0x3c   : > { %619 = vrot.lane.b32.xlu1 %v2039_v37, %s1840_s8  ;;  %617 = vrot.lane.b32.xlu0 %v2041_v38, %s1840_s8 }
  0x3f   : > { %731 = vrot.lane.b32.xlu2 %v2041_v38, %s1839_s17 }
  0x44   : > { %601 = vrot.lane.b32.xlu1 %v2052_v42, %s1840_s8  ;;  %733 = vrot.lane.b32.xlu0 %v2039_v37, %s1839_s17 }
  0x47   : > { %603 = vrot.lane.b32.xlu2 %v2064_v47, %s1840_s8 }
  0x4c   : > { %717 = vrot.lane.b32.xlu1 %v2064_v47, %s1839_s17  ;;  %715 = vrot.lane.b32.xlu0 %v2052_v42, %s1839_s17 }
  0x4f   : > { %621 = vrot.lane.b32.xlu2 %v2078_v54, %s1840_s8 }
  0x54   : > { %735 = vrot.lane.b32.xlu1 %v2078_v54, %s1839_s17  ;;  %623 = vrot.lane.b32.xlu0 %v2080_v55, %s1840_s8 }
  0x57   : > { %737 = vrot.lane.b32.xlu2 %v2080_v55, %s1839_s17 }
  0x5c   : > { %607 = vrot.lane.b32.xlu1 %v2099_v62, %s1840_s8  ;;  %605 = vrot.lane.b32.xlu0 %v2101_v63, %s1840_s8 }
  0x5f   : > { %719 = vrot.lane.b32.xlu2 %v2101_v63, %s1839_s17 }
  0x64   : > { %613 = vrot.lane.b32.xlu1 %v2112_v5, %s1840_s8  ;;  %721 = vrot.lane.b32.xlu0 %v2099_v62, %s1839_s17 }
  0x67   : > { %615 = vrot.lane.b32.xlu2 %v2127_v11, %s1840_s8 }
  0x6c   : > { %729 = vrot.lane.b32.xlu1 %v2127_v11, %s1839_s17  ;;  %727 = vrot.lane.b32.xlu0 %v2112_v5, %s1839_s17 }
  0x6f   : > { %609 = vrot.lane.b32.xlu2 %v2152_v21, %s1840_s8 }
  0x74   : > { %611 = vrot.lane.b32.xlu0 %v2150_v20, %s1840_s8  ;;  %723 = vrot.lane.b32.xlu1 %v2152_v21, %s1839_s17 }
  0x77   : > { %725 = vrot.lane.b32.xlu2 %v2150_v20, %s1839_s17 }
  0x79   : > { %v590_v43 = vpop.permute.xlu2 %589 }
  0x7a   : > { %650 = vst.msk [vmem:[#allocation2] sm:$0xff] %vm649_vm2, %v590_v43 }
  0x7b   : > { %693 = vst.msk [vmem:[#allocation2] sm:$0x1] %vm692_vm3, %v1841_v44 }
  0x7c   : > { %625 = vrot.lane.b32.xlu0 %v2170_v33, %s1840_s8  ;;  %627 = vrot.lane.b32.xlu1 %v2186_v1, %s1840_s8 }
  0x7f   : > { %739 = vrot.lane.b32.xlu2 %v2170_v33, %s1839_s17 }
  0x81   : > { %v592_v51 = vpop.permute.xlu2 %591 }
  0x82   : > { %651 = vst.msk [vmem:[#allocation2 + $0x8] sm:$0xff] %vm649_vm2, %v592_v51 }
  0x83   : > { %671 = vst.msk [vmem:[#allocation2 + $0x1] sm:$0xff] %vm670_vm4, %v2007_v24  ;;  %v1724_v24 = vld [vmem:[%s2511_s5 + $0x30] sm:$0xff] }
  0x84   : > { %741 = vrot.lane.b32.xlu0 %v2186_v1, %s1839_s17  ;;  %673 = vst.msk [vmem:[#allocation2 + $0x9] sm:$0x7f] %vm672_vm5, %v2022_v29  ;;  %v1718_v29 = vld [vmem:[%s2511_s5] sm:$0xff]  ;;  %938 = vmatpush.bf16.msra.mxu0 %v1724_v24 }
  0x85   : > { %786 = vst.msk [vmem:[#allocation2 + $0xf] sm:$0x1] %vm785_vm6, %v1841_v44  ;;  %1047 = vmatpush.bf16.msra.mxu1 %v1718_v29  ;;  %1741 = vmatpush.bf16.msra.mxu3 %v1724_v24 }
  0x89   : > { %v704_v58 = vpop.permute.xlu2 %703  ;;  %1742 = vmatpush.bf16.msrb.mxu3 %v1723_v0 }
  0x8a   : > { %764 = vst.msk [vmem:[#allocation2 - $0x1] sm:$0xfe] %vm763_vm7, %v704_v58 }
  0x8d   : > { %1743 = vmatpush.bf16.msrb.mxu3 %v1722_v41 }
  0x8e   : > { %v712_v56 = vpop.permute.xlu1 %711  ;;  %v598_v57 = vpop.permute.xlu0 %597 }
  0x8f   : > { %654 = vst.msk [vmem:[#allocation2 + $0x20] sm:$0xff] %vm649_vm2, %v598_v57 }
  0x90   : > { %695 = vst.msk [vmem:[#allocation2 + $0x20] sm:$0x1] %vm692_vm3, %v1841_v44 }
  0x91   : > { %v710_v2 = vpop.permute.xlu2 %709  ;;  %1744 = vmatpush.bf16.msrb.mxu3 %v1721_v48 }
  0x95   : > { %1745 = vmatpush.bf16.msrb.mxu3 %v1720_v50 }
  0x96   : > { %v714_v59 = vpop.permute.xlu1 %713  ;;  %v600_v60 = vpop.permute.xlu0 %599 }
  0x97   : > { %655 = vst.msk [vmem:[#allocation2 + $0x28] sm:$0xff] %vm649_vm2, %v600_v60 }
  0x98   : > { %676 = vst.msk [vmem:[#allocation2 + $0x21] sm:$0xff] %vm670_vm4, %v1959_v7 }
  0x99   : > { %677 = vst.msk [vmem:[#allocation2 + $0x29] sm:$0x7f] %vm672_vm5, %v1984_v16  ;;  %v732_v6 = vpop.permute.xlu2 %731  ;;  %1746 = vmatpush.bf16.msrb.mxu3 %v1719_v53 }
  0x9a   : > { %769 = vst.msk [vmem:[#allocation2 + $0x1f] sm:$0xfe] %vm763_vm7, %v712_v56 }
  0x9b   : > { %770 = vst.msk [vmem:[#allocation2 + $0x27] sm:$0xff] %vm765_vm8, %v714_v59 }
  0x9c   : > { %788 = vst.msk [vmem:[#allocation2 + $0x2f] sm:$0x1] %vm785_vm6, %v1841_v44 }
  0x9d   : > { %1747 = vmatpush.bf16.msrb.mxu3 %v1718_v29 }
  0x9e   : > { %v596_v3 = vpop.permute.xlu1 %595  ;;  %v594_v4 = vpop.permute.xlu0 %593 }
  0x9f   : > { %653 = vst.msk [vmem:[#allocation2 + $0x18] sm:$0xff] %vm649_vm2, %v596_v3 }
  0xa0   : > { %675 = vst.msk [vmem:[#allocation2 + $0x19] sm:$0x7f] %vm672_vm5, %v2012_v26 }
  0xa1   : > { %787 = vst.msk [vmem:[#allocation2 + $0x1f] sm:$0x1] %vm785_vm6, %v1841_v44  ;;  %v604_v10 = vpop.permute.xlu2 %603 }
  0xa2   : > { %652 = vst.msk [vmem:[#allocation2 + $0x10] sm:$0xff] %vm649_vm2, %v594_v4  ;;  %v1090_v7 = vld [vmem:[#allocation2 + $0x20] sm:$0xff] }
  0xa3   : > { %674 = vst.msk [vmem:[#allocation2 + $0x11] sm:$0xff] %vm670_vm4, %v2014_v27  ;;  %v1091_v16 = vld [vmem:[#allocation2 + $0x28] sm:$0xff] }
  0xa4   : > { %694 = vst.msk [vmem:[#allocation2 + $0x10] sm:$0x1] %vm692_vm3, %v1841_v44  ;;  %v2271_v8 = vpack.c.bf16 %v1091_v16, %v1090_v7 }
  0xa5   : > { %768 = vst.msk [vmem:[#allocation2 + $0x17] sm:$0xff] %vm765_vm8, %v710_v2 }
  0xa6   : > { %1700 = vmatmul.msk.bf16.vlgmr.msra.gmra.mxu2 %vm906_vm9, %v2271_v8  ;;  %v708_v26 = vpop.permute.xlu1 %707  ;;  %v706_v9 = vpop.permute.xlu0 %705  ;;  %657 = vst.msk [vmem:[#allocation2 + $0x38] sm:$0xff] %vm649_vm2, %v604_v10 }
  0xa7   : > { %767 = vst.msk [vmem:[#allocation2 + $0xf] sm:$0xfe] %vm763_vm7, %v708_v26 }
  0xa8   : > { %766 = vst.msk [vmem:[#allocation2 + $0x7] sm:$0xff] %vm765_vm8, %v706_v9 }
  0xa9   : > { %679 = vst.msk [vmem:[#allocation2 + $0x39] sm:$0x7f] %vm672_vm5, %v2064_v47  ;;  %v622_v23 = vpop.permute.xlu2 %621 }
  0xaa   : > { %789 = vst.msk [vmem:[#allocation2 + $0x3f] sm:$0x1] %vm785_vm6, %v1841_v44 }
  0xab   : > { %666 = vst.msk [vmem:[#allocation2 + $0x80] sm:$0xff] %vm649_vm2, %v622_v23 }
  0xac   : > { %v834_v27 = vld [vmem:[#allocation2 + $0x18] sm:$0xff]  ;;  %701 = vst.msk [vmem:[#allocation2 + $0x80] sm:$0x1] %vm692_vm3, %v1841_v44 }
  0xae   : > { %v620_v12 = vpop.permute.xlu1 %619  ;;  %v618_v13 = vpop.permute.xlu0 %617  ;;  %v833_v14 = vld [vmem:[#allocation2 + $0x10] sm:$0xff] }
  0xaf   : > { %665 = vst.msk [vmem:[#allocation2 + $0x78] sm:$0xff] %vm649_vm2, %v620_v12  ;;  %v849_v15 = vpack.c.bf16 %v834_v27, %v833_v14  ;;  %v796_v17 = vld [vmem:[#allocation2] sm:$0xff]  ;;  %v797_v18 = vld [vmem:[#allocation2 + $0x8] sm:$0xff] }
  0xb0   : > { %687 = vst.msk [vmem:[#allocation2 + $0x79] sm:$0x7f] %vm672_vm5, %v2039_v37  ;;  %v812_v25 = vpack.c.bf16 %v797_v18, %v796_v17 }
  0xb1   : > { %793 = vst.msk [vmem:[#allocation2 + $0x7f] sm:$0x1] %vm785_vm6, %v1841_v44  ;;  %1624 = vmatmul.msk.bf16.vlgmr.msra.gmra.mxu0 %vm906_vm9, %v849_v15  ;;  %v738_v28 = vpop.permute.xlu2 %737 }
  0xb2   : > { %664 = vst.msk [vmem:[#allocation2 + $0x70] sm:$0xff] %vm649_vm2, %v618_v13  ;;  %1656 = vmatmul.msk.bf16.vlgmr.msra.gmra.mxu1 %vm906_vm9, %v812_v25 }
  0xb3   : > { %686 = vst.msk [vmem:[#allocation2 + $0x71] sm:$0xff] %vm670_vm4, %v2041_v38 }
  0xb4   : > { %700 = vst.msk [vmem:[#allocation2 + $0x70] sm:$0x1] %vm692_vm3, %v1841_v44 }
  0xb5   : > { %779 = vst.msk [vmem:[#allocation2 + $0x6f] sm:$0xfe] %vm763_vm7, %v732_v6 }
  0xb6   : > { %v602_v47 = vpop.permute.xlu1 %601  ;;  %v734_v37 = vpop.permute.xlu0 %733 }
  0xb7   : > { %656 = vst.msk [vmem:[#allocation2 + $0x30] sm:$0xff] %vm649_vm2, %v602_v47 }
  0xb8   : > { %696 = vst.msk [vmem:[#allocation2 + $0x30] sm:$0x1] %vm692_vm3, %v1841_v44 }
  0xb9   : > { %780 = vst.msk [vmem:[#allocation2 + $0x77] sm:$0xff] %vm765_vm8, %v734_v37  ;;  %v720_v35 = vpop.permute.xlu2 %719 }
  0xba   : > { %678 = vst.msk [vmem:[#allocation2 + $0x31] sm:$0xff] %vm670_vm4, %v2052_v42 }
  0xbe   : > { %v718_v38 = vpop.permute.xlu1 %717  ;;  %v716_v30 = vpop.permute.xlu0 %715 }
  0xbf   : > { %772 = vst.msk [vmem:[#allocation2 + $0x37] sm:$0xff] %vm765_vm8, %v718_v38 }
  0xc0   : > { %771 = vst.msk [vmem:[#allocation2 + $0x2f] sm:$0xfe] %vm763_vm7, %v716_v30  ;;  %v845_v31 = vld [vmem:[#allocation2 + $0x70] sm:$0xff]  ;;  %v846_v32 = vld [vmem:[#allocation2 + $0x78] sm:$0xff] }
  0xc1   : > { %1625 = vmatmul.msk.bf16.gmra.mxu0 %vm906_vm9, %v2271_v8  ;;  %v2309_v36 = vpack.c.bf16 %v846_v32, %v845_v31 }
  0xc2   : > { %1657 = vmatmul.msk.bf16.gmra.mxu1 %vm906_vm9, %v849_v15 }
  0xc3   : > { %1630 = vmatmul.msk.bf16.vlgmr.msra.gmra.mxu3 %vm906_vm9, %v2309_v36 }
  0xc4   : > { %1748 = vmatpush.bf16.msra.mxu3 %v2096_v61  ;;  %v616_v61 = vpop.permute.xlu2 %615 }
  0xc5   : > { %663 = vst.msk [vmem:[#allocation2 + $0x68] sm:$0xff] %vm649_vm2, %v616_v61 }
  0xc6   : > { %v736_v42 = vpop.permute.xlu1 %735  ;;  %v624_v0 = vpop.permute.xlu0 %623  ;;  %v1093_v40 = vld [vmem:[#allocation2 + $0x38] sm:$0xff]  ;;  %685 = vst.msk [vmem:[#allocation2 + $0x69] sm:$0x7f] %vm672_vm5, %v2127_v11 }
  0xc7   : > { %667 = vst.msk [vmem:[#allocation2 + $0x88] sm:$0xff] %vm649_vm2, %v624_v0  ;;  %v1092_v41 = vld [vmem:[#allocation2 + $0x30] sm:$0xff] }
  0xc8   : > { %688 = vst.msk [vmem:[#allocation2 + $0x81] sm:$0xff] %vm670_vm4, %v2078_v54  ;;  %v1107_v43 = vpack.c.bf16 %v1093_v40, %v1092_v41  ;;  %1749 = vmatpush.bf16.msra.mxu3 %v2146_v19 }
  0xc9   : > { %689 = vst.msk [vmem:[#allocation2 + $0x89] sm:$0x7f] %vm672_vm5, %v2080_v55 }
  0xca   : > { %781 = vst.msk [vmem:[#allocation2 + $0x7f] sm:$0xfe] %vm763_vm7, %v736_v42  ;;  %1701 = vmatmul.msk.bf16.gmra.mxu2 %vm906_vm9, %v1107_v43 }
  0xcb   : > { %794 = vst.msk [vmem:[#allocation2 + $0x8f] sm:$0x1] %vm785_vm6, %v1841_v44 }
  0xcc   : > { %782 = vst.msk [vmem:[#allocation2 + $0x87] sm:$0xff] %vm765_vm8, %v738_v28  ;;  %1750 = vmatpush.bf16.msra.mxu3 %v2158_v22 }
  0xcd   : > { %792 = vst.msk [vmem:[#allocation2 + $0x6f] sm:$0x1] %vm785_vm6, %v1841_v44 }
  0xce   : > { %v608_v54 = vpop.permute.xlu1 %607  ;;  %v606_v46 = vpop.permute.xlu0 %605 }
  0xcf   : > { %659 = vst.msk [vmem:[#allocation2 + $0x48] sm:$0xff] %vm649_vm2, %v608_v54 }
  0xd0   : > { %681 = vst.msk [vmem:[#allocation2 + $0x49] sm:$0x7f] %vm672_vm5, %v2099_v62  ;;  %1751 = vmatpush.bf16.msra.mxu3 %v2175_v34 }
  0xd1   : > { %790 = vst.msk [vmem:[#allocation2 + $0x4f] sm:$0x1] %vm785_vm6, %v1841_v44  ;;  %1626 = vmatmul.msk.bf16.gmra.mxu0 %vm906_vm9, %v1107_v43 }
  0xd2   : > { %658 = vst.msk [vmem:[#allocation2 + $0x40] sm:$0xff] %vm649_vm2, %v606_v46  ;;  %1658 = vmatmul.msk.bf16.gmra.mxu1 %vm906_vm9, %v2271_v8 }
  0xd3   : > { %680 = vst.msk [vmem:[#allocation2 + $0x41] sm:$0xff] %vm670_vm4, %v2101_v63  ;;  %v847_v55 = vld [vmem:[#allocation2 + $0x80] sm:$0xff]  ;;  %v848_v11 = vld [vmem:[#allocation2 + $0x88] sm:$0xff]  ;;  %v610_v63 = vpop.permute.xlu2 %609 }
  0xd4   : > { %697 = vst.msk [vmem:[#allocation2 + $0x40] sm:$0x1] %vm692_vm3, %v1841_v44  ;;  %v856_v62 = vpack.c.bf16 %v848_v11, %v847_v55  ;;  %1752 = vmatpush.bf16.msra.mxu3 %v2191_v39 }
  0xd5   : > { %773 = vst.msk [vmem:[#allocation2 + $0x3f] sm:$0xfe] %vm763_vm7, %v720_v35 }
  0xd6   : > { %1631 = vmatmul.msk.bf16.gmra.mxu3 %vm906_vm9, %v856_v62  ;;  %v614_v19 = vpop.permute.xlu1 %613  ;;  %v722_v22 = vpop.permute.xlu0 %721  ;;  %660 = vst.msk [vmem:[#allocation2 + $0x50] sm:$0xff] %vm649_vm2, %v610_v63 }
  0xd7   : > { %662 = vst.msk [vmem:[#allocation2 + $0x60] sm:$0xff] %vm649_vm2, %v614_v19 }
  0xd8   : > { %699 = vst.msk [vmem:[#allocation2 + $0x60] sm:$0x1] %vm692_vm3, %v1841_v44  ;;  %1753 = vmatpush.bf16.msra.mxu3 %v2210_v45 }
  0xd9   : > { %774 = vst.msk [vmem:[#allocation2 + $0x47] sm:$0xff] %vm765_vm8, %v722_v22 }
  0xda   : > { %684 = vst.msk [vmem:[#allocation2 + $0x61] sm:$0xff] %vm670_vm4, %v2112_v5 }
  0xdb   : > { %698 = vst.msk [vmem:[#allocation2 + $0x50] sm:$0x1] %vm692_vm3, %v1841_v44  ;;  %v726_v52 = vpop.permute.xlu2 %725 }
  0xde   : > { %v730_v34 = vpop.permute.xlu1 %729  ;;  %v728_v39 = vpop.permute.xlu0 %727 }
  0xdf   : > { %778 = vst.msk [vmem:[#allocation2 + $0x67] sm:$0xff] %vm765_vm8, %v730_v34 }
  0xe0   : > { %777 = vst.msk [vmem:[#allocation2 + $0x5f] sm:$0xfe] %vm763_vm7, %v728_v39  ;;  %v839_v48 = vld [vmem:[#allocation2 + $0x40] sm:$0xff]  ;;  %v840_v49 = vld [vmem:[#allocation2 + $0x48] sm:$0xff] }
  0xe1   : > { %v852_v50 = vpack.c.bf16 %v840_v49, %v839_v48 }
  0xe2   : > { %1659 = vmatmul.msk.bf16.gmra.mxu1 %vm906_vm9, %v1107_v43 }
  0xe3   : > { %1627 = vmatmul.msk.bf16.gmra.mxu0 %vm906_vm9, %v852_v50  ;;  %1702 = vmatmul.msk.bf16.gmra.mxu2 %vm906_vm9, %v852_v50  ;;  %v740_v57 = vpop.permute.xlu2 %739 }
  0xe6   : > { %v612_v5 = vpop.permute.xlu0 %611  ;;  %v809_v45 = vld [vmem:[#allocation2 + $0x68] sm:$0xff]  ;;  %v724_v53 = vpop.permute.xlu1 %723 }
  0xe7   : > { %661 = vst.msk [vmem:[#allocation2 + $0x58] sm:$0xff] %vm649_vm2, %v612_v5  ;;  %v808_v51 = vld [vmem:[#allocation2 + $0x60] sm:$0xff] }
  0xe8   : > { %682 = vst.msk [vmem:[#allocation2 + $0x51] sm:$0xff] %vm670_vm4, %v2152_v21  ;;  %v818_v24 = vpack.c.bf16 %v809_v45, %v808_v51 }
  0xe9   : > { %683 = vst.msk [vmem:[#allocation2 + $0x59] sm:$0x7f] %vm672_vm5, %v2150_v20 }
  0xea   : > { %791 = vst.msk [vmem:[#allocation2 + $0x5f] sm:$0x1] %vm785_vm6, %v1841_v44  ;;  %1662 = vmatmul.msk.bf16.vlgmr.msrb.gmra.mxu3 %vm906_vm9, %v818_v24 }
  0xeb   : > { %776 = vst.msk [vmem:[#allocation2 + $0x57] sm:$0xff] %vm765_vm8, %v726_v52 }
  0xec   : > { %775 = vst.msk [vmem:[#allocation2 + $0x4f] sm:$0xfe] %vm763_vm7, %v724_v53 }
  0xee   : > { %v626_v56 = vpop.permute.xlu0 %625  ;;  %v628_v21 = vpop.permute.xlu1 %627 }
  0xef   : > { %668 = vst.msk [vmem:[#allocation2 + $0x90] sm:$0xff] %vm649_vm2, %v626_v56 }
  0xf0   : > { %702 = vst.msk [vmem:[#allocation2 + $0x90] sm:$0x1] %vm692_vm3, %v1841_v44 }
  0xf1   : > { %669 = vst.msk [vmem:[#allocation2 + $0x98] sm:$0xff] %vm649_vm2, %v628_v21 }
  0xf2   : > { %1660 = vmatmul.msk.bf16.gmra.mxu1 %vm906_vm9, %v852_v50  ;;  %v842_v20 = vld [vmem:[#allocation2 + $0x58] sm:$0xff]  ;;  %690 = vst.msk [vmem:[#allocation2 + $0x91] sm:$0xff] %vm670_vm4, %v2170_v33 }
  0xf3   : > { %v841_v29 = vld [vmem:[#allocation2 + $0x50] sm:$0xff]  ;;  %691 = vst.msk [vmem:[#allocation2 + $0x99] sm:$0x7f] %vm672_vm5, %v2186_v1 }
  0xf4   : > { %v853_v58 = vpack.c.bf16 %v842_v20, %v841_v29  ;;  %795 = vst.msk [vmem:[#allocation2 + $0x9f] sm:$0x1] %vm785_vm6, %v1841_v44 }
  0xf5   : > { %783 = vst.msk [vmem:[#allocation2 + $0x8f] sm:$0xfe] %vm763_vm7, %v740_v57 }
  0xf6   : > { %1628 = vmatmul.msk.bf16.gmra.mxu0 %vm906_vm9, %v853_v58  ;;  %1703 = vmatmul.msk.bf16.gmra.mxu2 %vm906_vm9, %v853_v58  ;;  %v742_v59 = vpop.permute.xlu0 %741 }
  0xf7   : > { %784 = vst.msk [vmem:[#allocation2 + $0x97] sm:$0xff] %vm765_vm8, %v742_v59 }
  0xfa   : > { %1663 = vmatmul.msk.bf16.gmra.mxu3 %vm906_vm9, %v2309_v36 }
  0xfe   : > { %v1104_v33 = vld [vmem:[#allocation2 + $0x90] sm:$0xff]  ;;  %v1105_v1 = vld [vmem:[#allocation2 + $0x98] sm:$0xff] }
  0xff   : > { %v1113_v44 = vpack.c.bf16 %v1105_v1, %v1104_v33 }
 0x102   : > { %1661 = vmatmul.msk.bf16.gmra.mxu1 %vm906_vm9, %v853_v58 }
 0x106   : > { %1629 = vmatmul.msk.bf16.gmra.mxu0 %vm906_vm9, %v818_v24  ;;  %1704 = vmatmul.msk.bf16.gmra.mxu2 %vm906_vm9, %v818_v24 }
 0x10a   : > { %1706 = vmatmul.msk.bf16.vlgmr.msra.gmra.mxu3 %vm906_vm9, %v856_v62 }
 0x116   : > { %1705 = vmatmul.msk.bf16.gmra.mxu2 %vm906_vm9, %v2309_v36 }
 0x11a   : > { %1707 = vmatmul.msk.bf16.gmra.mxu3 %vm906_vm9, %v1113_v44 }
 0x129   : > { %v1196_v2 = vpop.f32.mrf.mxu2 }
 0x12e   : > { %v940_v60 = vpop.f32.mrf.mxu0 }
 0x12f   : > { %v1049_v3 = vpop.f32.mrf.mxu1 }
 0x130   : > { %v1050_v4 = vadd.f32 %v1049_v3, %v940_v60 }
 0x131   : > { %v1198_v26 = vpop.f32.mrf.mxu2 }
 0x132   : > { %v1236_v6 = vadd.f32 %v1196_v2, %v1050_v4 }
 0x134   : > { %1252 = vst.msk [vmem:[%s2403_s14] sm:$0xff] %vm670_vm4, %v1236_v6  ;;  %v1305_v9 = vmul.f32 %v1236_v6, %v1236_v6  ;;  %v1268_v27 = vsel %vm670_vm4, %v1236_v6, 0.0 }
 0x136   : > { %v942_v7 = vpop.f32.mrf.mxu0  ;;  %v1321_v15 = vsel %vm670_vm4, %v1305_v9, 0.0 }
 0x137   : > { %v1051_v16 = vpop.f32.mrf.mxu1 }
 0x138   : > { %v1052_v8 = vadd.f32 %v1051_v16, %v942_v7 }
 0x13a   : > { %v1237_v10 = vadd.f32 %v1198_v26, %v1052_v8 }
 0x13c   : > { %1253 = vst.msk [vmem:[%s2403_s14 + $0x8] sm:$0xff] %vm670_vm4, %v1237_v10  ;;  %v1269_v12 = vsel %vm670_vm4, %v1237_v10, 0.0  ;;  %v1306_v13 = vmul.f32 %v1237_v10, %v1237_v10 }
 0x13d   : > { %v1270_v14 = vadd.f32 %v1269_v12, %v1268_v27 }
 0x13e   : > { %v1322_v17 = vsel %vm670_vm4, %v1306_v13, 0.0  ;;  %v945_v25 = vpop.f32.mrf.mxu0 }
 0x13f   : > { %v1323_v18 = vadd.f32 %v1322_v17, %v1321_v15  ;;  %v1054_v23 = vpop.f32.mrf.mxu1 }
 0x140   : > { %v1055_v37 = vadd.f32 %v1054_v23, %v945_v25 }
 0x146   : > { %v970_v47 = vpop.f32.mrf.mxu3  ;;  %v947_v31 = vpop.f32.mrf.mxu0 }
 0x147   : > { %v1056_v38 = vpop.f32.mrf.mxu1 }
 0x148   : > { %v1057_v41 = vadd.f32 %v1056_v38, %v947_v31 }
 0x14d   : > { %v1201_v28 = vpop.f32.mrf.mxu2 }
 0x14e   : > { %v1238_v30 = vadd.f32 %v1201_v28, %v1055_v37  ;;  %v972_v0 = vpop.f32.mrf.mxu3  ;;  %v950_v46 = vpop.f32.mrf.mxu0 }
 0x14f   : > { %v1059_v54 = vpop.f32.mrf.mxu1 }
 0x150   : > { %1254 = vst.msk [vmem:[%s2403_s14 + $0x10] sm:$0xff] %vm670_vm4, %v1238_v30  ;;  %v1271_v32 = vsel %vm670_vm4, %v1238_v30, 0.0  ;;  %v1307_v35 = vmul.f32 %v1238_v30, %v1238_v30  ;;  %v1060_v19 = vadd.f32 %v1059_v54, %v950_v46 }
 0x151   : > { %v1272_v36 = vadd.f32 %v1271_v32, %v1270_v14 }
 0x152   : > { %v1324_v42 = vsel %vm670_vm4, %v1307_v35, 0.0 }
 0x153   : > { %v2417_v40 = vadd.f32 %v1324_v42, %v1323_v18 }
 0x155   : > { %v1203_v43 = vpop.f32.mrf.mxu2 }
 0x156   : > { %v1239_v61 = vadd.f32 %v1203_v43, %v1057_v41  ;;  %v952_v62 = vpop.f32.mrf.mxu0 }
 0x157   : > { %v1061_v11 = vpop.f32.mrf.mxu1 }
 0x158   : > { %1255 = vst.msk [vmem:[%s2403_s14 + $0x18] sm:$0xff] %vm670_vm4, %v1239_v61  ;;  %v1062_v48 = vadd.f32 %v1061_v11, %v952_v62  ;;  %v1308_v8 = vmul.f32 %v1239_v61, %v1239_v61  ;;  %v1273_v10 = vsel %vm670_vm4, %v1239_v61, 0.0 }
 0x159   : > { %v2421_v55 = vpop.f32.mrf.mxu3  ;;  %v1274_v23 = vadd.f32 %v1273_v10, %v1272_v36 }
 0x15a   : > { %v1326_v14 = vsel %vm670_vm4, %v1308_v8, 0.0 }
 0x15b   : > { %v1327_v31 = vadd.f32 %v1326_v14, %v2417_v40 }
 0x15f   : > { %v1064_v39 = vpop.f32.mrf.mxu1 }
 0x160   : > { %v955_v49 = vpop.f32.mrf.mxu0 }
 0x161   : > { %v2423_v22 = vpop.f32.mrf.mxu3  ;;  %v1065_v24 = vadd.f32 %v1064_v39, %v955_v49 }
 0x166   : > { %v1206_v63 = vpop.f32.mrf.mxu2 }
 0x167   : > { %v1240_v34 = vadd.f32 %v1206_v63, %v1060_v19  ;;  %v1066_v53 = vpop.f32.mrf.mxu1 }
 0x168   : > { %v957_v52 = vpop.f32.mrf.mxu0 }
 0x169   : > { %1256 = vst.msk [vmem:[%s2403_s14 + $0x20] sm:$0xff] %vm670_vm4, %v1240_v34  ;;  %v1067_v29 = vadd.f32 %v1066_v53, %v957_v52  ;;  %v1309_v27 = vmul.f32 %v1240_v34, %v1240_v34  ;;  %v1275_v15 = vsel %vm670_vm4, %v1240_v34, 0.0 }
 0x16a   : > { %v1276_v32 = vadd.f32 %v1275_v15, %v1274_v23 }
 0x16b   : > { %v1328_v37 = vsel %vm670_vm4, %v1309_v27, 0.0 }
 0x16c   : > { %v1329_v36 = vadd.f32 %v1328_v37, %v1327_v31 }
 0x16d   : > { %v1079_v50 = vpop.f32.mrf.mxu3 }
 0x16e   : > { %v1208_v5 = vpop.f32.mrf.mxu2  ;;  %v1080_v6 = vadd.f32 %v1079_v50, %v970_v47 }
 0x16f   : > { %v1241_v45 = vadd.f32 %v1208_v5, %v1062_v48  ;;  %v1069_v58 = vpop.f32.mrf.mxu1 }
 0x171   : > { %1257 = vst.msk [vmem:[%s2403_s14 + $0x28] sm:$0xff] %vm670_vm4, %v1241_v45  ;;  %v1310_v17 = vmul.f32 %v1241_v45, %v1241_v45  ;;  %v1277_v28 = vsel %vm670_vm4, %v1241_v45, 0.0 }
 0x172   : > { %v1278_v43 = vadd.f32 %v1277_v28, %v1276_v32 }
 0x173   : > { %v960_v57 = vpop.f32.mrf.mxu0  ;;  %v1330_v35 = vsel %vm670_vm4, %v1310_v17, 0.0 }
 0x174   : > { %v1070_v44 = vadd.f32 %v1069_v58, %v960_v57  ;;  %v1331_v40 = vadd.f32 %v1330_v35, %v1329_v36 }
 0x175   : > { %v1081_v51 = vpop.f32.mrf.mxu3 }
 0x176   : > { %v1082_v18 = vadd.f32 %v1081_v51, %v972_v0 }
 0x177   : > { %v1071_v4 = vpop.f32.mrf.mxu1 }
 0x179   : > { %v1211_v56 = vpop.f32.mrf.mxu2 }
 0x17a   : > { %v1242_v21 = vadd.f32 %v1211_v56, %v1065_v24 }
 0x17b   : > { %v962_v60 = vpop.f32.mrf.mxu0 }
 0x17c   : > { %1258 = vst.msk [vmem:[%s2403_s14 + $0x30] sm:$0xff] %vm670_vm4, %v1242_v21  ;;  %v1072_v26 = vadd.f32 %v1071_v4, %v962_v60  ;;  %v1311_v38 = vmul.f32 %v1242_v21, %v1242_v21  ;;  %v1279_v42 = vsel %vm670_vm4, %v1242_v21, 0.0 }
 0x17d   : > { %v1084_v20 = vpop.f32.mrf.mxu3  ;;  %v1280_v19 = vadd.f32 %v1279_v42, %v1278_v43 }
 0x17e   : > { %v1332_v54 = vsel %vm670_vm4, %v1311_v38, 0.0  ;;  %v1085_v63 = vadd.f32 %v1084_v20, %v2421_v55 }
 0x17f   : > { %v1074_v25 = vpop.f32.mrf.mxu1  ;;  %v1333_v49 = vadd.f32 %v1332_v54, %v1331_v40 }
 0x181   : > { %v1213_v59 = vpop.f32.mrf.mxu2 }
 0x182   : > { %v1243_v33 = vadd.f32 %v1213_v59, %v1067_v29 }
 0x183   : > { %v965_v13 = vpop.f32.mrf.mxu0 }
 0x184   : > { %1259 = vst.msk [vmem:[%s2403_s14 + $0x38] sm:$0xff] %vm670_vm4, %v1243_v33  ;;  %v1312_v41 = vmul.f32 %v1243_v33, %v1243_v33  ;;  %v1075_v0 = vadd.f32 %v1074_v25, %v965_v13  ;;  %v1281_v46 = vsel %vm670_vm4, %v1243_v33, 0.0 }
 0x185   : > { %v2433_v1 = vpop.f32.mrf.mxu3  ;;  %v1282_v50 = vadd.f32 %v1281_v46, %v1280_v19 }
 0x186   : > { %v1334_v34 = vsel %vm670_vm4, %v1312_v41, 0.0  ;;  %v1087_v4 = vadd.f32 %v2433_v1, %v2423_v22 }
 0x187   : > { %v1335_v56 = vadd.f32 %v1334_v34, %v1333_v49  ;;  %v1076_v55 = vpop.f32.mrf.mxu1 }
 0x189   : > { %v1216_v2 = vpop.f32.mrf.mxu2 }
 0x18a   : > { %v1244_v3 = vadd.f32 %v1216_v2, %v1070_v44 }
 0x18b   : > { %v967_v5 = vpop.f32.mrf.mxu0 }
 0x18c   : > { %1260 = vst.msk [vmem:[%s2403_s14 + $0x40] sm:$0xff] %vm670_vm4, %v1244_v3  ;;  %v1313_v11 = vmul.f32 %v1244_v3, %v1244_v3  ;;  %v1283_v39 = vsel %vm670_vm4, %v1244_v3, 0.0  ;;  %v1077_v20 = vadd.f32 %v1076_v55, %v967_v5 }
 0x18d   : > { %v1226_v7 = vpop.f32.mrf.mxu3  ;;  %v1284_v21 = vadd.f32 %v1283_v39, %v1282_v50 }
 0x18e   : > { %v2437_v16 = vadd.f32 %v1226_v7, %v1080_v6  ;;  %v1336_v51 = vsel %vm670_vm4, %v1313_v11, 0.0 }
 0x18f   : > { %v1337_v58 = vadd.f32 %v1336_v51, %v1335_v56 }
 0x190   : > { %1264 = vst.msk [vmem:[%s2403_s14 + $0x60] sm:$0xff] %vm670_vm4, %v2437_v16  ;;  %v1317_v6 = vmul.f32 %v2437_v16, %v2437_v16  ;;  %v1291_v27 = vsel %vm670_vm4, %v2437_v16, 0.0 }
 0x191   : > { %v1218_v9 = vpop.f32.mrf.mxu2 }
 0x192   : > { %v1245_v12 = vadd.f32 %v1218_v9, %v1072_v26  ;;  %v1344_v15 = vsel %vm670_vm4, %v1317_v6, 0.0 }
 0x194   : > { %1261 = vst.msk [vmem:[%s2403_s14 + $0x48] sm:$0xff] %vm670_vm4, %v1245_v12  ;;  %v1314_v48 = vmul.f32 %v1245_v12, %v1245_v12  ;;  %v1285_v52 = vsel %vm670_vm4, %v1245_v12, 0.0 }
 0x195   : > { %v1228_v47 = vpop.f32.mrf.mxu3  ;;  %v1286_v59 = vadd.f32 %v1285_v52, %v1284_v21 }
 0x196   : > { %v1249_v30 = vadd.f32 %v1228_v47, %v1082_v18  ;;  %v1338_v57 = vsel %vm670_vm4, %v1314_v48, 0.0 }
 0x197   : > { %v1339_v2 = vadd.f32 %v1338_v57, %v1337_v58 }
 0x198   : > { %1265 = vst.msk [vmem:[%s2403_s14 + $0x68] sm:$0xff] %vm670_vm4, %v1249_v30  ;;  %v1318_v12 = vmul.f32 %v1249_v30, %v1249_v30  ;;  %v1293_v17 = vsel %vm670_vm4, %v1249_v30, 0.0 }
 0x199   : > { %v1221_v61 = vpop.f32.mrf.mxu2 }
 0x19a   : > { %v1246_v62 = vadd.f32 %v1221_v61, %v1075_v0  ;;  %v1346_v47 = vsel %vm670_vm4, %v1318_v12, 0.0 }
 0x19c   : > { %1262 = vst.msk [vmem:[%s2403_s14 + $0x50] sm:$0xff] %vm670_vm4, %v1246_v62  ;;  %v1315_v53 = vmul.f32 %v1246_v62, %v1246_v62  ;;  %v1287_v29 = vsel %vm670_vm4, %v1246_v62, 0.0 }
 0x19d   : > { %v1231_v45 = vpop.f32.mrf.mxu3  ;;  %v1288_v3 = vadd.f32 %v1287_v29, %v1286_v59 }
 0x19e   : > { %v1250_v24 = vadd.f32 %v1231_v45, %v1085_v63  ;;  %v1340_v44 = vsel %vm670_vm4, %v1315_v53, 0.0 }
 0x19f   : > { %v1341_v26 = vadd.f32 %v1340_v44, %v1339_v2 }
 0x1a0   : > { %1266 = vst.msk [vmem:[%s2403_s14 + $0x70] sm:$0xff] %vm670_vm4, %v1250_v24  ;;  %v1319_v18 = vmul.f32 %v1250_v24, %v1250_v24  ;;  %v1295_v37 = vsel %vm670_vm4, %v1250_v24, 0.0 }
 0x1a1   : > { %v1223_v33 = vpop.f32.mrf.mxu2 }
 0x1a2   : > { %v1247_v60 = vadd.f32 %v1223_v33, %v1077_v20  ;;  %v1348_v31 = vsel %vm670_vm4, %v1319_v18, 0.0 }
 0x1a4   : > { %1263 = vst.msk [vmem:[%s2403_s14 + $0x58] sm:$0xff] %vm670_vm4, %v1247_v60  ;;  %v1289_v7 = vsel %vm670_vm4, %v1247_v60, 0.0  ;;  %v1316_v8 = vmul.f32 %v1247_v60, %v1247_v60 }
 0x1a5   : > { %v1290_v9 = vadd.f32 %v1289_v7, %v1288_v3  ;;  %v1233_v10 = vpop.f32.mrf.mxu3 }
 0x1a6   : > { %v1342_v13 = vsel %vm670_vm4, %v1316_v8, 0.0  ;;  %v1251_v14 = vadd.f32 %v1233_v10, %v1087_v4 }
 0x1a7   : > { %v1292_v22 = vadd.f32 %v1291_v27, %v1290_v9  ;;  %v1343_v1 = vadd.f32 %v1342_v13, %v1341_v26 }
 0x1a8   : > { %1267 = vst.msk [vmem:[%s2403_s14 + $0x78] sm:$0xff] %vm670_vm4, %v1251_v14  ;;  %v1320_v16 = vmul.f32 %v1251_v14, %v1251_v14  ;;  %v1297_v32 = vsel %vm670_vm4, %v1251_v14, 0.0 }
 0x1a9   : > { %v1345_v23 = vadd.f32 %v1344_v15, %v1343_v1  ;;  %v1294_v25 = vadd.f32 %v1293_v17, %v1292_v22 }
 0x1aa   : > { %v1350_v30 = vsel %vm670_vm4, %v1320_v16, 0.0 }
 0x1ab   : > { %v1296_v28 = vadd.f32 %v1295_v37, %v1294_v25  ;;  %v1347_v38 = vadd.f32 %v1346_v47, %v1345_v23 }
 0x1ad   : > { %v1298_v35 = vadd.f32 %v1297_v32, %v1296_v28  ;;  %v1349_v42 = vadd.f32 %v1348_v31, %v1347_v38 }
 0x1af   : > { %v1299_v41 = vrot.slane %v1298_v35, 4  ;;  %v1351_v0 = vadd.f32 %v1350_v30, %v1349_v42 }
 0x1b1   : > { %v1300_v36 = vadd.f32 %v1299_v41, %v1298_v35  ;;  %v1352_v43 = vrot.slane %v1351_v0, 4 }
 0x1b3   : > { %v1301_v61 = vrot.slane %v1300_v36, 2  ;;  %v1353_v54 = vadd.f32 %v1352_v43, %v1351_v0 }
 0x1b5   : > { %v1302_v46 = vadd.f32 %v1301_v61, %v1300_v36  ;;  %v1354_v11 = vrot.slane %v1353_v54, 2 }
 0x1b7   : > { %v1303_v62 = vrot.slane %v1302_v46, 1  ;;  %v1355_v40 = vadd.f32 %v1354_v11, %v1353_v54 }
 0x1b9   : > { %v1356_v19 = vrot.slane %v1355_v40, 1  ;;  %v1304_v63 = vadd.f32 %v1303_v62, %v1302_v46 }
 0x1bb   : > { %v1357_v34 = vadd.f32 %v1356_v19, %v1355_v40 }
 0x1bd   : > { %v1359_v39 = vsel %vm1358_vm10, %v1304_v63, %v1357_v34 }
 0x1be   : > { %1361 = vst.msk [vmem:[%s467_s12] sm:$0x3] %vm1360_vm11, %v1359_v39 }
 0x1bf PF: > { %s18_s28 = sadd.s32 1, %s1837_s28   ;;  %s2517_s24 = smov %s1829_s26 }
 0x1c0   : > { %p15_p12 = scmp.ge.s32.totalorder %s18_s28, 6   ;;  %s2518_s25 = smov %s1833_s27 }
 0x1c1   : > { %s2519_s26 = smov %s2522_s29  ;;  %s2520_s27 = smov %s2526_s30 }
 0x1c2   :  { %17 = sbr.rel (!%p15_p12) target bundleno = 3 (0x3), region = 96 }

</bundles_post_ra>
